<compile_context>
chip_gen: v7x
topology: tpu7x:2x2x1
jax: 0.10.0
libtpu: 0.0.40
codegen_flags: <defaults>
</compile_context>

<pallas_src>
import numpy as np

import jax
import jax.numpy as jnp
from jax.experimental import pallas as pl
from jax.experimental.pallas import tpu as pltpu

IMAGE_SIZE = (16, 16)   # H, W -> spatial per layer: 64 -> 16 -> 4 -> 1
LEAKY_SLOPE = 0.2
IN_EPS = 0.8

# ---- static layout of the packed operand slabs (row offsets, multiples of 8
#      so every in-kernel slice starts sublane-aligned) ------------------------
W0_R, B0_R = 0, 32            # conv0: (27, 16) stacked weight, (16,) bias
W1_R, B1_R = 40, 184          # conv1: (144, 32)
W2_R, B2_R = 192, 480         # conv2: (288, 64)
W3_R, B3_R = 488, 1064        # conv3: (576, 128)
FCW_R, FCB_R = 1072, 1080     # adv layer: Linear(128 -> 1)
WSLAB_ROWS, WSLAB_COLS = 1088, 128

G1_R, G2_R, G3_R = 0, 144, 216          # per-tap gather stacks, taps 8-aligned
GSLAB_ROWS, GSLAB_COLS = 288, 64


# ----------------------------- Pallas kernel ---------------------------------

def _fused_discriminator_kernel(p0_ref, w_ref, g_ref, out_ref):
    """One sample per grid step; every intermediate stays in VMEM.

    p0_ref : (1, 64, 27)   im2col patches of this sample's image (layer 0)
    w_ref  : (1088, 128)   packed conv/fc weights + biases (see *_R offsets)
    g_ref  : (288, 64)     packed per-sample 3x3 tap-gather matrices
    out_ref: (1, 1, 1)     validity for this sample
    """

    def leaky(v):
        return jnp.where(v >= 0.0, v, LEAKY_SLOPE * v)

    # ---- layer 0: conv(3->16, 3x3, s2, p1) + LeakyReLU (no InstanceNorm) ----
    w0 = w_ref[W0_R:W0_R + 27, 0:16]
    b0 = w_ref[B0_R:B0_R + 1, 0:16]
    act = leaky(jnp.dot(p0_ref[0], w0, preferred_element_type=jnp.float32) + b0)
    # Dropout2d(0.25): identity at inference.

    # ---- layers 1..3: conv + LeakyReLU + InstanceNorm(eps=0.8) --------------
    def conv_in_block(act, taps, w_row, k, b_row, cout):
        # Gather the 9 taps (spatial gather expressed on the MXU), concatenate
        # along channels into an im2col slab, then ONE conv matmul with
        # K = 9*Cin and f32 accumulation.
        cols = [jnp.dot(g, act, preferred_element_type=jnp.float32)
                for g in taps]
        slab = jnp.concatenate(cols, axis=-1)              # (P_out, 9*Cin)
        w = w_ref[w_row:w_row + k, 0:cout]                 # (9*Cin, Cout)
        b = w_ref[b_row:b_row + 1, 0:cout]
        y = leaky(jnp.dot(slab, w, preferred_element_type=jnp.float32) + b)
        # Dropout2d(0.25): identity at inference.
        # Per-sample, per-channel InstanceNorm (biased var, eps=0.8) as a
        # cheap sublane reduction — no block-diagonal averaging matmuls.
        mean = jnp.mean(y, axis=0, keepdims=True)
        cent = y - mean
        var = jnp.mean(cent * cent, axis=0, keepdims=True)
        return cent * jax.lax.rsqrt(var + IN_EPS)

    taps1 = [g_ref[G1_R + 16 * t:G1_R + 16 * t + 16, 0:64] for t in range(9)]
    act = conv_in_block(act, taps1, W1_R, 144, B1_R, 32)    # (16, 32)

    taps2 = [g_ref[G2_R + 8 * t:G2_R + 8 * t + 4, 0:16] for t in range(9)]
    act = conv_in_block(act, taps2, W2_R, 288, B2_R, 64)    # (4, 64)

    taps3 = [g_ref[G3_R + 8 * t:G3_R + 8 * t + 1, 0:4] for t in range(9)]
    act = conv_in_block(act, taps3, W3_R, 576, B3_R, 128)   # (1, 128)

    # ---- adv layer: Linear(128 -> 1) + Sigmoid as VPU mul + lane reduce -----
    fcw = w_ref[FCW_R:FCW_R + 1, 0:128]
    fcb = w_ref[FCB_R:FCB_R + 1, 0:1]
    logit = jnp.sum(act * fcw, axis=-1, keepdims=True) + fcb
    out_ref[0] = jax.nn.sigmoid(logit).astype(out_ref.dtype)


# --------------------- static (trace-time) structure --------------------------

def _conv_out_hw(h, w):
    return (h + 2 - 3) // 2 + 1, (w + 2 - 3) // 2 + 1


def _im2col_3x3_s2_p1(x):
    """x: [N, H, W, C] NHWC -> patches [N, Ho*Wo, 9*C], tap-major / cin-minor."""
    n, h, w, c = x.shape
    ho, wo = _conv_out_hw(h, w)
    xp = jnp.pad(x, ((0, 0), (1, 1), (1, 1), (0, 0)))
    cols = []
    for kh in range(3):
        for kw in range(3):
            cols.append(xp[:, kh:kh + 2 * ho:2, kw:kw + 2 * wo:2, :])
    patches = jnp.concatenate(cols, axis=-1)               # [N, Ho, Wo, 9*C]
    return patches.reshape(n, ho * wo, 9 * c)


def _tap_gather_per_sample(h, w):
    """G[t] @ act performs the 3x3/s2/p1 spatial gather for tap t on a single
    sample's (H*W, C) activation slab; all-zero rows implement zero padding."""
    ho, wo = _conv_out_hw(h, w)
    G = np.zeros((9, ho * wo, h * w), np.float32)
    for oh in range(ho):
        for ow in range(wo):
            r = oh * wo + ow
            for kh in range(3):
                for kw in range(3):
                    ih = 2 * oh + kh - 1
                    iw = 2 * ow + kw - 1
                    if 0 <= ih < h and 0 <= iw < w:
                        G[kh * 3 + kw, r, ih * w + iw] = 1.0
    return G


def _build_gather_slab():
    """Pack the per-sample gather matrices of layers 1..3 into one f32 slab.
    Each tap starts at a sublane-aligned row so in-kernel slices are static."""
    slab = np.zeros((GSLAB_ROWS, GSLAB_COLS), np.float32)
    g1 = _tap_gather_per_sample(8, 8)    # (9, 16, 64)
    g2 = _tap_gather_per_sample(4, 4)    # (9, 4, 16)
    g3 = _tap_gather_per_sample(2, 2)    # (9, 1, 4)
    for t in range(9):
        slab[G1_R + 16 * t:G1_R + 16 * t + 16, 0:64] = g1[t]
        slab[G2_R + 8 * t:G2_R + 8 * t + 4, 0:16] = g2[t]
        slab[G3_R + 8 * t:G3_R + 8 * t + 1, 0:4] = g3[t]
    return slab


def _stack_conv_weight(wt):
    """(Cout, Cin, 3, 3) torch layout -> (9*Cin, Cout), rows ordered (kh,kw,ci)
    to match the tap-major / cin-minor im2col slab columns."""
    co, ci = wt.shape[0], wt.shape[1]
    return jnp.transpose(wt, (2, 3, 1, 0)).reshape(9 * ci, co)


def _pack_weight_slab(params):
    """All conv/fc weights + biases in one lane-dense (1088, 128) f32 slab."""
    slab = jnp.zeros((WSLAB_ROWS, WSLAB_COLS), jnp.float32)
    slab = slab.at[W0_R:W0_R + 27, 0:16].set(_stack_conv_weight(params["conv0_w"]))
    slab = slab.at[B0_R, 0:16].set(params["conv0_b"])
    slab = slab.at[W1_R:W1_R + 144, 0:32].set(_stack_conv_weight(params["conv1_w"]))
    slab = slab.at[B1_R, 0:32].set(params["conv1_b"])
    slab = slab.at[W2_R:W2_R + 288, 0:64].set(_stack_conv_weight(params["conv2_w"]))
    slab = slab.at[B2_R, 0:64].set(params["conv2_b"])
    slab = slab.at[W3_R:W3_R + 576, 0:128].set(_stack_conv_weight(params["conv3_w"]))
    slab = slab.at[B3_R, 0:128].set(params["conv3_b"])
    slab = slab.at[FCW_R, 0:128].set(params["fc_w"][:, 0])
    slab = slab.at[FCB_R, 0].set(params["fc_b"][0])
    return slab


# ------------------------------ forward ---------------------------------------

def discriminator_forward(params, img_nchw):
    """img_nchw: [N, 3, H, W] (PyTorch layout). Returns validity [N, 1]."""
    n, cin, h, w = img_nchw.shape
    assert (h, w) == IMAGE_SIZE and cin == 3, "kernel is specialised to 3x16x16"

    x = jnp.transpose(img_nchw, (0, 2, 3, 1))                 # NHWC
    # Layer-0 im2col (13.5 KB at N=2) built in the wrapper; layers 1..3 gather
    # entirely inside the kernel via the packed per-sample tap matrices.
    patches0 = _im2col_3x3_s2_p1(x)                           # (N, 64, 27)
    wslab = _pack_weight_slab(params)                         # (1088, 128)
    gslab = jnp.asarray(_build_gather_slab())                 # (288, 64)

    out = pl.pallas_call(
        _fused_discriminator_kernel,
        out_shape=jax.ShapeDtypeStruct((n, 1, 1), jnp.float32),
        grid=(n,),
        in_specs=[
            pl.BlockSpec((1, 64, 27), lambda i: (i, 0, 0)),
            pl.BlockSpec((WSLAB_ROWS, WSLAB_COLS), lambda i: (0, 0)),
            pl.BlockSpec((GSLAB_ROWS, GSLAB_COLS), lambda i: (0, 0)),
        ],
        out_specs=pl.BlockSpec((1, 1, 1), lambda i: (i, 0, 0)),
        compiler_params=pltpu.CompilerParams(
            dimension_semantics=("parallel",)),
    )(patches0, wslab, gslab)
    return out.reshape(n, 1)


# --------------------------- pure-JAX reference --------------------------------

def _reference_forward(params, img_nchw):
    x = img_nchw
    for idx, use_in in enumerate((False, True, True, True)):
        wgt = params[f"conv{idx}_w"]
        b = params[f"conv{idx}_b"]
        x = jax.lax.conv_general_dilated(
            x, wgt, window_strides=(2, 2), padding=((1, 1), (1, 1)),
            dimension_numbers=("NCHW", "OIHW", "NCHW"))
        x = x + b[None, :, None, None]
        x = jnp.where(x >= 0, x, LEAKY_SLOPE * x)
        if use_in:
            mean = jnp.mean(x, axis=(2, 3), keepdims=True)
            var = jnp.mean((x - mean) ** 2, axis=(2, 3), keepdims=True)
            x = (x - mean) * jax.lax.rsqrt(var + IN_EPS)
    flat = x.reshape(x.shape[0], -1)
    return jax.nn.sigmoid(flat @ params["fc_w"] + params["fc_b"])


# --------------------------- Parameter init ------------------------------------

def init_params(key):
    """Deterministic synthetic params matching the module's shapes."""
    params = {}
    chans = [(3, 16), (16, 32), (32, 64), (64, 128)]
    for idx, (cin, cout) in enumerate(chans):
        key, kw_, kb_ = jax.random.split(key, 3)
        fan_in = cin * 9
        scale = 1.0 / jnp.sqrt(fan_in)
        params[f"conv{idx}_w"] = scale * jax.random.normal(
            kw_, (cout, cin, 3, 3), jnp.float32)
        params[f"conv{idx}_b"] = scale * jax.random.normal(
            kb_, (cout,), jnp.float32)
    ds = IMAGE_SIZE[0] // 2 ** 4
    feat = 128 * ds ** 2
    key, kw_, kb_ = jax.random.split(key, 3)
    params["fc_w"] = (1.0 / jnp.sqrt(feat)) * jax.random.normal(
        kw_, (feat, 1), jnp.float32)
    params["fc_b"] = (1.0 / jnp.sqrt(feat)) * jax.random.normal(
        kb_, (1,), jnp.float32)
    return params


if __name__ == "__main__":
    key = jax.random.PRNGKey(0)
    kp, kx = jax.random.split(key)
    params = init_params(kp)
    img = jax.random.normal(kx, (2, 3, IMAGE_SIZE[0], IMAGE_SIZE[1]), jnp.float32)

    validity = jax.block_until_ready(jax.jit(discriminator_forward)(params, img))
    ref = jax.block_until_ready(_reference_forward(params, img))

    assert validity.shape == (2, 1)
    assert bool(jnp.all(jnp.isfinite(validity)))
    assert bool(jnp.allclose(validity, ref, rtol=1e-4, atol=1e-5))
    print("KERNEL_OK")
</pallas_src>

<mosaic_0001>
module attributes {stable_mosaic.version = 11 : i64} {
  func.func @_fused_discriminator_kernel(%arg0: i32, %arg1: memref<1x64x27xf32, #tpu.memory_space<vmem>>, %arg2: memref<1088x128xf32, #tpu.memory_space<vmem>>, %arg3: memref<288x64xf32, #tpu.memory_space<vmem>>, %arg4: memref<1x1x1xf32, #tpu.memory_space<vmem>>) attributes {dimension_semantics = [#tpu.dimension_semantics<parallel>], iteration_bounds = array<i64: 2>, scalar_prefetch = 0 : i64, scratch_operands = 0 : i64, tpu.core_type = #tpu.core_type<tc>, window_params = [{transform_indices = @transform_0, window_bounds = array<i64: 1, 64, 27>}, {pipeline_mode = #tpu.pipeline_mode<synchronous>, transform_indices = @transform_1, window_bounds = array<i64: 1088, 128>}, {pipeline_mode = #tpu.pipeline_mode<synchronous>, transform_indices = @transform_2, window_bounds = array<i64: 288, 64>}, {transform_indices = @transform_3, window_bounds = array<i64: 1, 1, 1>}]} {
    %c0 = arith.constant 0 : index
    %c0_0 = arith.constant 0 : index
    %0 = vector.load %arg2[%c0, %c0_0] : memref<1088x128xf32, #tpu.memory_space<vmem>>, vector<27x16xf32>
    %c32 = arith.constant 32 : index
    %c0_1 = arith.constant 0 : index
    %1 = vector.load %arg2[%c32, %c0_1] : memref<1088x128xf32, #tpu.memory_space<vmem>>, vector<1x16xf32>
    %c0_2 = arith.constant 0 : index
    %c0_3 = arith.constant 0 : index
    %c0_4 = arith.constant 0 : index
    %2 = vector.load %arg1[%c0_2, %c0_3, %c0_4] : memref<1x64x27xf32, #tpu.memory_space<vmem>>, vector<1x64x27xf32>
    %3 = vector.shape_cast %2 : vector<1x64x27xf32> to vector<64x27xf32>
    %cst = arith.constant dense<0.000000e+00> : vector<64x16xf32>
    %4 = tpu.matmul %3, %0, %cst {dimension_numbers = #tpu.dot_dimension_numbers<[1], [0], [0], [1], [0, 0, 1, 1], [], []>} : vector<64x27xf32>, vector<27x16xf32>, vector<64x16xf32> -> vector<64x16xf32>
    %5 = vector.broadcast %1 : vector<1x16xf32> to vector<64x16xf32>
    %6 = arith.addf %4, %5 : vector<64x16xf32>
    %cst_5 = arith.constant 0.000000e+00 : f32
    %7 = vector.broadcast %cst_5 : f32 to vector<64x16xf32>
    %8 = arith.cmpf oge, %6, %7 : vector<64x16xf32>
    %cst_6 = arith.constant 2.000000e-01 : f32
    %9 = vector.broadcast %cst_6 : f32 to vector<64x16xf32>
    %10 = arith.mulf %9, %6 : vector<64x16xf32>
    %11 = arith.select %8, %6, %10 : vector<64x16xi1>, vector<64x16xf32>
    %c0_7 = arith.constant 0 : index
    %c0_8 = arith.constant 0 : index
    %12 = vector.load %arg3[%c0_7, %c0_8] : memref<288x64xf32, #tpu.memory_space<vmem>>, vector<16x64xf32>
    %c16 = arith.constant 16 : index
    %c0_9 = arith.constant 0 : index
    %13 = vector.load %arg3[%c16, %c0_9] : memref<288x64xf32, #tpu.memory_space<vmem>>, vector<16x64xf32>
    %c32_10 = arith.constant 32 : index
    %c0_11 = arith.constant 0 : index
    %14 = vector.load %arg3[%c32_10, %c0_11] : memref<288x64xf32, #tpu.memory_space<vmem>>, vector<16x64xf32>
    %c48 = arith.constant 48 : index
    %c0_12 = arith.constant 0 : index
    %15 = vector.load %arg3[%c48, %c0_12] : memref<288x64xf32, #tpu.memory_space<vmem>>, vector<16x64xf32>
    %c64 = arith.constant 64 : index
    %c0_13 = arith.constant 0 : index
    %16 = vector.load %arg3[%c64, %c0_13] : memref<288x64xf32, #tpu.memory_space<vmem>>, vector<16x64xf32>
    %c80 = arith.constant 80 : index
    %c0_14 = arith.constant 0 : index
    %17 = vector.load %arg3[%c80, %c0_14] : memref<288x64xf32, #tpu.memory_space<vmem>>, vector<16x64xf32>
    %c96 = arith.constant 96 : index
    %c0_15 = arith.constant 0 : index
    %18 = vector.load %arg3[%c96, %c0_15] : memref<288x64xf32, #tpu.memory_space<vmem>>, vector<16x64xf32>
    %c112 = arith.constant 112 : index
    %c0_16 = arith.constant 0 : index
    %19 = vector.load %arg3[%c112, %c0_16] : memref<288x64xf32, #tpu.memory_space<vmem>>, vector<16x64xf32>
    %c128 = arith.constant 128 : index
    %c0_17 = arith.constant 0 : index
    %20 = vector.load %arg3[%c128, %c0_17] : memref<288x64xf32, #tpu.memory_space<vmem>>, vector<16x64xf32>
    %cst_18 = arith.constant dense<0.000000e+00> : vector<16x16xf32>
    %21 = tpu.matmul %12, %11, %cst_18 {dimension_numbers = #tpu.dot_dimension_numbers<[1], [0], [0], [1], [0, 0, 1, 1], [], []>} : vector<16x64xf32>, vector<64x16xf32>, vector<16x16xf32> -> vector<16x16xf32>
    %cst_19 = arith.constant dense<0.000000e+00> : vector<16x16xf32>
    %22 = tpu.matmul %13, %11, %cst_19 {dimension_numbers = #tpu.dot_dimension_numbers<[1], [0], [0], [1], [0, 0, 1, 1], [], []>} : vector<16x64xf32>, vector<64x16xf32>, vector<16x16xf32> -> vector<16x16xf32>
    %cst_20 = arith.constant dense<0.000000e+00> : vector<16x16xf32>
    %23 = tpu.matmul %14, %11, %cst_20 {dimension_numbers = #tpu.dot_dimension_numbers<[1], [0], [0], [1], [0, 0, 1, 1], [], []>} : vector<16x64xf32>, vector<64x16xf32>, vector<16x16xf32> -> vector<16x16xf32>
    %cst_21 = arith.constant dense<0.000000e+00> : vector<16x16xf32>
    %24 = tpu.matmul %15, %11, %cst_21 {dimension_numbers = #tpu.dot_dimension_numbers<[1], [0], [0], [1], [0, 0, 1, 1], [], []>} : vector<16x64xf32>, vector<64x16xf32>, vector<16x16xf32> -> vector<16x16xf32>
    %cst_22 = arith.constant dense<0.000000e+00> : vector<16x16xf32>
    %25 = tpu.matmul %16, %11, %cst_22 {dimension_numbers = #tpu.dot_dimension_numbers<[1], [0], [0], [1], [0, 0, 1, 1], [], []>} : vector<16x64xf32>, vector<64x16xf32>, vector<16x16xf32> -> vector<16x16xf32>
    %cst_23 = arith.constant dense<0.000000e+00> : vector<16x16xf32>
    %26 = tpu.matmul %17, %11, %cst_23 {dimension_numbers = #tpu.dot_dimension_numbers<[1], [0], [0], [1], [0, 0, 1, 1], [], []>} : vector<16x64xf32>, vector<64x16xf32>, vector<16x16xf32> -> vector<16x16xf32>
    %cst_24 = arith.constant dense<0.000000e+00> : vector<16x16xf32>
    %27 = tpu.matmul %18, %11, %cst_24 {dimension_numbers = #tpu.dot_dimension_numbers<[1], [0], [0], [1], [0, 0, 1, 1], [], []>} : vector<16x64xf32>, vector<64x16xf32>, vector<16x16xf32> -> vector<16x16xf32>
    %cst_25 = arith.constant dense<0.000000e+00> : vector<16x16xf32>
    %28 = tpu.matmul %19, %11, %cst_25 {dimension_numbers = #tpu.dot_dimension_numbers<[1], [0], [0], [1], [0, 0, 1, 1], [], []>} : vector<16x64xf32>, vector<64x16xf32>, vector<16x16xf32> -> vector<16x16xf32>
    %cst_26 = arith.constant dense<0.000000e+00> : vector<16x16xf32>
    %29 = tpu.matmul %20, %11, %cst_26 {dimension_numbers = #tpu.dot_dimension_numbers<[1], [0], [0], [1], [0, 0, 1, 1], [], []>} : vector<16x64xf32>, vector<64x16xf32>, vector<16x16xf32> -> vector<16x16xf32>
    %30 = tpu.concatenate %21, %22, %23, %24, %25, %26, %27, %28, %29 in 1 : vector<16x16xf32>, vector<16x16xf32>, vector<16x16xf32>, vector<16x16xf32>, vector<16x16xf32>, vector<16x16xf32>, vector<16x16xf32>, vector<16x16xf32>, vector<16x16xf32> -> vector<16x144xf32>
    %c40 = arith.constant 40 : index
    %c0_27 = arith.constant 0 : index
    %31 = vector.load %arg2[%c40, %c0_27] : memref<1088x128xf32, #tpu.memory_space<vmem>>, vector<144x32xf32>
    %c184 = arith.constant 184 : index
    %c0_28 = arith.constant 0 : index
    %32 = vector.load %arg2[%c184, %c0_28] : memref<1088x128xf32, #tpu.memory_space<vmem>>, vector<1x32xf32>
    %cst_29 = arith.constant dense<0.000000e+00> : vector<16x32xf32>
    %33 = tpu.matmul %30, %31, %cst_29 {dimension_numbers = #tpu.dot_dimension_numbers<[1], [0], [0], [1], [0, 0, 1, 1], [], []>} : vector<16x144xf32>, vector<144x32xf32>, vector<16x32xf32> -> vector<16x32xf32>
    %34 = vector.broadcast %32 : vector<1x32xf32> to vector<16x32xf32>
    %35 = arith.addf %33, %34 : vector<16x32xf32>
    %cst_30 = arith.constant 0.000000e+00 : f32
    %36 = vector.broadcast %cst_30 : f32 to vector<16x32xf32>
    %37 = arith.cmpf oge, %35, %36 : vector<16x32xf32>
    %cst_31 = arith.constant 2.000000e-01 : f32
    %38 = vector.broadcast %cst_31 : f32 to vector<16x32xf32>
    %39 = arith.mulf %38, %35 : vector<16x32xf32>
    %40 = arith.select %37, %35, %39 : vector<16x32xi1>, vector<16x32xf32>
    %cst_32 = arith.constant dense<0.000000e+00> : vector<32xf32>
    %41 = vector.multi_reduction <add>, %40, %cst_32 [0] : vector<16x32xf32> to vector<32xf32>
    %42 = vector.shape_cast %41 : vector<32xf32> to vector<1x32xf32>
    %cst_33 = arith.constant 1.600000e+01 : f32
    %43 = vector.broadcast %cst_33 : f32 to vector<1x32xf32>
    %44 = arith.divf %42, %43 : vector<1x32xf32>
    %45 = vector.broadcast %44 : vector<1x32xf32> to vector<16x32xf32>
    %46 = arith.subf %40, %45 : vector<16x32xf32>
    %47 = arith.mulf %46, %46 : vector<16x32xf32>
    %cst_34 = arith.constant dense<0.000000e+00> : vector<32xf32>
    %48 = vector.multi_reduction <add>, %47, %cst_34 [0] : vector<16x32xf32> to vector<32xf32>
    %49 = vector.shape_cast %48 : vector<32xf32> to vector<1x32xf32>
    %cst_35 = arith.constant 1.600000e+01 : f32
    %50 = vector.broadcast %cst_35 : f32 to vector<1x32xf32>
    %51 = arith.divf %49, %50 : vector<1x32xf32>
    %cst_36 = arith.constant 8.000000e-01 : f32
    %52 = vector.broadcast %cst_36 : f32 to vector<1x32xf32>
    %53 = arith.addf %51, %52 : vector<1x32xf32>
    %54 = math.rsqrt %53 : vector<1x32xf32>
    %55 = vector.broadcast %54 : vector<1x32xf32> to vector<16x32xf32>
    %56 = arith.mulf %46, %55 : vector<16x32xf32>
    %c144 = arith.constant 144 : index
    %c0_37 = arith.constant 0 : index
    %57 = vector.load %arg3[%c144, %c0_37] : memref<288x64xf32, #tpu.memory_space<vmem>>, vector<4x16xf32>
    %c152 = arith.constant 152 : index
    %c0_38 = arith.constant 0 : index
    %58 = vector.load %arg3[%c152, %c0_38] : memref<288x64xf32, #tpu.memory_space<vmem>>, vector<4x16xf32>
    %c160 = arith.constant 160 : index
    %c0_39 = arith.constant 0 : index
    %59 = vector.load %arg3[%c160, %c0_39] : memref<288x64xf32, #tpu.memory_space<vmem>>, vector<4x16xf32>
    %c168 = arith.constant 168 : index
    %c0_40 = arith.constant 0 : index
    %60 = vector.load %arg3[%c168, %c0_40] : memref<288x64xf32, #tpu.memory_space<vmem>>, vector<4x16xf32>
    %c176 = arith.constant 176 : index
    %c0_41 = arith.constant 0 : index
    %61 = vector.load %arg3[%c176, %c0_41] : memref<288x64xf32, #tpu.memory_space<vmem>>, vector<4x16xf32>
    %c184_42 = arith.constant 184 : index
    %c0_43 = arith.constant 0 : index
    %62 = vector.load %arg3[%c184_42, %c0_43] : memref<288x64xf32, #tpu.memory_space<vmem>>, vector<4x16xf32>
    %c192 = arith.constant 192 : index
    %c0_44 = arith.constant 0 : index
    %63 = vector.load %arg3[%c192, %c0_44] : memref<288x64xf32, #tpu.memory_space<vmem>>, vector<4x16xf32>
    %c200 = arith.constant 200 : index
    %c0_45 = arith.constant 0 : index
    %64 = vector.load %arg3[%c200, %c0_45] : memref<288x64xf32, #tpu.memory_space<vmem>>, vector<4x16xf32>
    %c208 = arith.constant 208 : index
    %c0_46 = arith.constant 0 : index
    %65 = vector.load %arg3[%c208, %c0_46] : memref<288x64xf32, #tpu.memory_space<vmem>>, vector<4x16xf32>
    %cst_47 = arith.constant dense<0.000000e+00> : vector<4x32xf32>
    %66 = tpu.matmul %57, %56, %cst_47 {dimension_numbers = #tpu.dot_dimension_numbers<[1], [0], [0], [1], [0, 0, 1, 1], [], []>} : vector<4x16xf32>, vector<16x32xf32>, vector<4x32xf32> -> vector<4x32xf32>
    %cst_48 = arith.constant dense<0.000000e+00> : vector<4x32xf32>
    %67 = tpu.matmul %58, %56, %cst_48 {dimension_numbers = #tpu.dot_dimension_numbers<[1], [0], [0], [1], [0, 0, 1, 1], [], []>} : vector<4x16xf32>, vector<16x32xf32>, vector<4x32xf32> -> vector<4x32xf32>
    %cst_49 = arith.constant dense<0.000000e+00> : vector<4x32xf32>
    %68 = tpu.matmul %59, %56, %cst_49 {dimension_numbers = #tpu.dot_dimension_numbers<[1], [0], [0], [1], [0, 0, 1, 1], [], []>} : vector<4x16xf32>, vector<16x32xf32>, vector<4x32xf32> -> vector<4x32xf32>
    %cst_50 = arith.constant dense<0.000000e+00> : vector<4x32xf32>
    %69 = tpu.matmul %60, %56, %cst_50 {dimension_numbers = #tpu.dot_dimension_numbers<[1], [0], [0], [1], [0, 0, 1, 1], [], []>} : vector<4x16xf32>, vector<16x32xf32>, vector<4x32xf32> -> vector<4x32xf32>
    %cst_51 = arith.constant dense<0.000000e+00> : vector<4x32xf32>
    %70 = tpu.matmul %61, %56, %cst_51 {dimension_numbers = #tpu.dot_dimension_numbers<[1], [0], [0], [1], [0, 0, 1, 1], [], []>} : vector<4x16xf32>, vector<16x32xf32>, vector<4x32xf32> -> vector<4x32xf32>
    %cst_52 = arith.constant dense<0.000000e+00> : vector<4x32xf32>
    %71 = tpu.matmul %62, %56, %cst_52 {dimension_numbers = #tpu.dot_dimension_numbers<[1], [0], [0], [1], [0, 0, 1, 1], [], []>} : vector<4x16xf32>, vector<16x32xf32>, vector<4x32xf32> -> vector<4x32xf32>
    %cst_53 = arith.constant dense<0.000000e+00> : vector<4x32xf32>
    %72 = tpu.matmul %63, %56, %cst_53 {dimension_numbers = #tpu.dot_dimension_numbers<[1], [0], [0], [1], [0, 0, 1, 1], [], []>} : vector<4x16xf32>, vector<16x32xf32>, vector<4x32xf32> -> vector<4x32xf32>
    %cst_54 = arith.constant dense<0.000000e+00> : vector<4x32xf32>
    %73 = tpu.matmul %64, %56, %cst_54 {dimension_numbers = #tpu.dot_dimension_numbers<[1], [0], [0], [1], [0, 0, 1, 1], [], []>} : vector<4x16xf32>, vector<16x32xf32>, vector<4x32xf32> -> vector<4x32xf32>
    %cst_55 = arith.constant dense<0.000000e+00> : vector<4x32xf32>
    %74 = tpu.matmul %65, %56, %cst_55 {dimension_numbers = #tpu.dot_dimension_numbers<[1], [0], [0], [1], [0, 0, 1, 1], [], []>} : vector<4x16xf32>, vector<16x32xf32>, vector<4x32xf32> -> vector<4x32xf32>
    %75 = tpu.concatenate %66, %67, %68, %69, %70, %71, %72, %73, %74 in 1 : vector<4x32xf32>, vector<4x32xf32>, vector<4x32xf32>, vector<4x32xf32>, vector<4x32xf32>, vector<4x32xf32>, vector<4x32xf32>, vector<4x32xf32>, vector<4x32xf32> -> vector<4x288xf32>
    %c192_56 = arith.constant 192 : index
    %c0_57 = arith.constant 0 : index
    %76 = vector.load %arg2[%c192_56, %c0_57] : memref<1088x128xf32, #tpu.memory_space<vmem>>, vector<288x64xf32>
    %c480 = arith.constant 480 : index
    %c0_58 = arith.constant 0 : index
    %77 = vector.load %arg2[%c480, %c0_58] : memref<1088x128xf32, #tpu.memory_space<vmem>>, vector<1x64xf32>
    %cst_59 = arith.constant dense<0.000000e+00> : vector<4x64xf32>
    %78 = tpu.matmul %75, %76, %cst_59 {dimension_numbers = #tpu.dot_dimension_numbers<[1], [0], [0], [1], [0, 0, 1, 1], [], []>} : vector<4x288xf32>, vector<288x64xf32>, vector<4x64xf32> -> vector<4x64xf32>
    %79 = vector.broadcast %77 : vector<1x64xf32> to vector<4x64xf32>
    %80 = arith.addf %78, %79 : vector<4x64xf32>
    %cst_60 = arith.constant 0.000000e+00 : f32
    %81 = vector.broadcast %cst_60 : f32 to vector<4x64xf32>
    %82 = arith.cmpf oge, %80, %81 : vector<4x64xf32>
    %cst_61 = arith.constant 2.000000e-01 : f32
    %83 = vector.broadcast %cst_61 : f32 to vector<4x64xf32>
    %84 = arith.mulf %83, %80 : vector<4x64xf32>
    %85 = arith.select %82, %80, %84 : vector<4x64xi1>, vector<4x64xf32>
    %cst_62 = arith.constant dense<0.000000e+00> : vector<64xf32>
    %86 = vector.multi_reduction <add>, %85, %cst_62 [0] : vector<4x64xf32> to vector<64xf32>
    %87 = vector.shape_cast %86 : vector<64xf32> to vector<1x64xf32>
    %cst_63 = arith.constant 4.000000e+00 : f32
    %88 = vector.broadcast %cst_63 : f32 to vector<1x64xf32>
    %89 = arith.divf %87, %88 : vector<1x64xf32>
    %90 = vector.broadcast %89 : vector<1x64xf32> to vector<4x64xf32>
    %91 = arith.subf %85, %90 : vector<4x64xf32>
    %92 = arith.mulf %91, %91 : vector<4x64xf32>
    %cst_64 = arith.constant dense<0.000000e+00> : vector<64xf32>
    %93 = vector.multi_reduction <add>, %92, %cst_64 [0] : vector<4x64xf32> to vector<64xf32>
    %94 = vector.shape_cast %93 : vector<64xf32> to vector<1x64xf32>
    %cst_65 = arith.constant 4.000000e+00 : f32
    %95 = vector.broadcast %cst_65 : f32 to vector<1x64xf32>
    %96 = arith.divf %94, %95 : vector<1x64xf32>
    %cst_66 = arith.constant 8.000000e-01 : f32
    %97 = vector.broadcast %cst_66 : f32 to vector<1x64xf32>
    %98 = arith.addf %96, %97 : vector<1x64xf32>
    %99 = math.rsqrt %98 : vector<1x64xf32>
    %100 = vector.broadcast %99 : vector<1x64xf32> to vector<4x64xf32>
    %101 = arith.mulf %91, %100 : vector<4x64xf32>
    %c216 = arith.constant 216 : index
    %c0_67 = arith.constant 0 : index
    %102 = vector.load %arg3[%c216, %c0_67] : memref<288x64xf32, #tpu.memory_space<vmem>>, vector<1x4xf32>
    %c224 = arith.constant 224 : index
    %c0_68 = arith.constant 0 : index
    %103 = vector.load %arg3[%c224, %c0_68] : memref<288x64xf32, #tpu.memory_space<vmem>>, vector<1x4xf32>
    %c232 = arith.constant 232 : index
    %c0_69 = arith.constant 0 : index
    %104 = vector.load %arg3[%c232, %c0_69] : memref<288x64xf32, #tpu.memory_space<vmem>>, vector<1x4xf32>
    %c240 = arith.constant 240 : index
    %c0_70 = arith.constant 0 : index
    %105 = vector.load %arg3[%c240, %c0_70] : memref<288x64xf32, #tpu.memory_space<vmem>>, vector<1x4xf32>
    %c248 = arith.constant 248 : index
    %c0_71 = arith.constant 0 : index
    %106 = vector.load %arg3[%c248, %c0_71] : memref<288x64xf32, #tpu.memory_space<vmem>>, vector<1x4xf32>
    %c256 = arith.constant 256 : index
    %c0_72 = arith.constant 0 : index
    %107 = vector.load %arg3[%c256, %c0_72] : memref<288x64xf32, #tpu.memory_space<vmem>>, vector<1x4xf32>
    %c264 = arith.constant 264 : index
    %c0_73 = arith.constant 0 : index
    %108 = vector.load %arg3[%c264, %c0_73] : memref<288x64xf32, #tpu.memory_space<vmem>>, vector<1x4xf32>
    %c272 = arith.constant 272 : index
    %c0_74 = arith.constant 0 : index
    %109 = vector.load %arg3[%c272, %c0_74] : memref<288x64xf32, #tpu.memory_space<vmem>>, vector<1x4xf32>
    %c280 = arith.constant 280 : index
    %c0_75 = arith.constant 0 : index
    %110 = vector.load %arg3[%c280, %c0_75] : memref<288x64xf32, #tpu.memory_space<vmem>>, vector<1x4xf32>
    %cst_76 = arith.constant dense<0.000000e+00> : vector<1x64xf32>
    %111 = tpu.matmul %102, %101, %cst_76 {dimension_numbers = #tpu.dot_dimension_numbers<[1], [0], [0], [1], [0, 0, 1, 1], [], []>} : vector<1x4xf32>, vector<4x64xf32>, vector<1x64xf32> -> vector<1x64xf32>
    %cst_77 = arith.constant dense<0.000000e+00> : vector<1x64xf32>
    %112 = tpu.matmul %103, %101, %cst_77 {dimension_numbers = #tpu.dot_dimension_numbers<[1], [0], [0], [1], [0, 0, 1, 1], [], []>} : vector<1x4xf32>, vector<4x64xf32>, vector<1x64xf32> -> vector<1x64xf32>
    %cst_78 = arith.constant dense<0.000000e+00> : vector<1x64xf32>
    %113 = tpu.matmul %104, %101, %cst_78 {dimension_numbers = #tpu.dot_dimension_numbers<[1], [0], [0], [1], [0, 0, 1, 1], [], []>} : vector<1x4xf32>, vector<4x64xf32>, vector<1x64xf32> -> vector<1x64xf32>
    %cst_79 = arith.constant dense<0.000000e+00> : vector<1x64xf32>
    %114 = tpu.matmul %105, %101, %cst_79 {dimension_numbers = #tpu.dot_dimension_numbers<[1], [0], [0], [1], [0, 0, 1, 1], [], []>} : vector<1x4xf32>, vector<4x64xf32>, vector<1x64xf32> -> vector<1x64xf32>
    %cst_80 = arith.constant dense<0.000000e+00> : vector<1x64xf32>
    %115 = tpu.matmul %106, %101, %cst_80 {dimension_numbers = #tpu.dot_dimension_numbers<[1], [0], [0], [1], [0, 0, 1, 1], [], []>} : vector<1x4xf32>, vector<4x64xf32>, vector<1x64xf32> -> vector<1x64xf32>
    %cst_81 = arith.constant dense<0.000000e+00> : vector<1x64xf32>
    %116 = tpu.matmul %107, %101, %cst_81 {dimension_numbers = #tpu.dot_dimension_numbers<[1], [0], [0], [1], [0, 0, 1, 1], [], []>} : vector<1x4xf32>, vector<4x64xf32>, vector<1x64xf32> -> vector<1x64xf32>
    %cst_82 = arith.constant dense<0.000000e+00> : vector<1x64xf32>
    %117 = tpu.matmul %108, %101, %cst_82 {dimension_numbers = #tpu.dot_dimension_numbers<[1], [0], [0], [1], [0, 0, 1, 1], [], []>} : vector<1x4xf32>, vector<4x64xf32>, vector<1x64xf32> -> vector<1x64xf32>
    %cst_83 = arith.constant dense<0.000000e+00> : vector<1x64xf32>
    %118 = tpu.matmul %109, %101, %cst_83 {dimension_numbers = #tpu.dot_dimension_numbers<[1], [0], [0], [1], [0, 0, 1, 1], [], []>} : vector<1x4xf32>, vector<4x64xf32>, vector<1x64xf32> -> vector<1x64xf32>
    %cst_84 = arith.constant dense<0.000000e+00> : vector<1x64xf32>
    %119 = tpu.matmul %110, %101, %cst_84 {dimension_numbers = #tpu.dot_dimension_numbers<[1], [0], [0], [1], [0, 0, 1, 1], [], []>} : vector<1x4xf32>, vector<4x64xf32>, vector<1x64xf32> -> vector<1x64xf32>
    %120 = tpu.concatenate %111, %112, %113, %114, %115, %116, %117, %118, %119 in 1 : vector<1x64xf32>, vector<1x64xf32>, vector<1x64xf32>, vector<1x64xf32>, vector<1x64xf32>, vector<1x64xf32>, vector<1x64xf32>, vector<1x64xf32>, vector<1x64xf32> -> vector<1x576xf32>
    %c488 = arith.constant 488 : index
    %c0_85 = arith.constant 0 : index
    %121 = vector.load %arg2[%c488, %c0_85] : memref<1088x128xf32, #tpu.memory_space<vmem>>, vector<576x128xf32>
    %c1064 = arith.constant 1064 : index
    %c0_86 = arith.constant 0 : index
    %122 = vector.load %arg2[%c1064, %c0_86] : memref<1088x128xf32, #tpu.memory_space<vmem>>, vector<1x128xf32>
    %cst_87 = arith.constant dense<0.000000e+00> : vector<1x128xf32>
    %123 = tpu.matmul %120, %121, %cst_87 {dimension_numbers = #tpu.dot_dimension_numbers<[1], [0], [0], [1], [0, 0, 1, 1], [], []>} : vector<1x576xf32>, vector<576x128xf32>, vector<1x128xf32> -> vector<1x128xf32>
    %124 = arith.addf %123, %122 : vector<1x128xf32>
    %cst_88 = arith.constant 0.000000e+00 : f32
    %125 = vector.broadcast %cst_88 : f32 to vector<1x128xf32>
    %126 = arith.cmpf oge, %124, %125 : vector<1x128xf32>
    %cst_89 = arith.constant 2.000000e-01 : f32
    %127 = vector.broadcast %cst_89 : f32 to vector<1x128xf32>
    %128 = arith.mulf %127, %124 : vector<1x128xf32>
    %129 = arith.select %126, %124, %128 : vector<1x128xi1>, vector<1x128xf32>
    %cst_90 = arith.constant dense<0.000000e+00> : vector<128xf32>
    %130 = vector.multi_reduction <add>, %129, %cst_90 [0] : vector<1x128xf32> to vector<128xf32>
    %131 = vector.shape_cast %130 : vector<128xf32> to vector<1x128xf32>
    %cst_91 = arith.constant 1.000000e+00 : f32
    %132 = vector.broadcast %cst_91 : f32 to vector<1x128xf32>
    %133 = arith.divf %131, %132 : vector<1x128xf32>
    %134 = arith.subf %129, %133 : vector<1x128xf32>
    %135 = arith.mulf %134, %134 : vector<1x128xf32>
    %cst_92 = arith.constant dense<0.000000e+00> : vector<128xf32>
    %136 = vector.multi_reduction <add>, %135, %cst_92 [0] : vector<1x128xf32> to vector<128xf32>
    %137 = vector.shape_cast %136 : vector<128xf32> to vector<1x128xf32>
    %cst_93 = arith.constant 1.000000e+00 : f32
    %138 = vector.broadcast %cst_93 : f32 to vector<1x128xf32>
    %139 = arith.divf %137, %138 : vector<1x128xf32>
    %cst_94 = arith.constant 8.000000e-01 : f32
    %140 = vector.broadcast %cst_94 : f32 to vector<1x128xf32>
    %141 = arith.addf %139, %140 : vector<1x128xf32>
    %142 = math.rsqrt %141 : vector<1x128xf32>
    %143 = arith.mulf %134, %142 : vector<1x128xf32>
    %c1072 = arith.constant 1072 : index
    %c0_95 = arith.constant 0 : index
    %144 = vector.load %arg2[%c1072, %c0_95] : memref<1088x128xf32, #tpu.memory_space<vmem>>, vector<1x128xf32>
    %c1080 = arith.constant 1080 : index
    %c0_96 = arith.constant 0 : index
    %145 = vector.load %arg2[%c1080, %c0_96] : memref<1088x128xf32, #tpu.memory_space<vmem>>, vector<1x1xf32>
    %146 = arith.mulf %143, %144 : vector<1x128xf32>
    %cst_97 = arith.constant dense<0.000000e+00> : vector<1xf32>
    %147 = vector.multi_reduction <add>, %146, %cst_97 [1] : vector<1x128xf32> to vector<1xf32>
    %148 = vector.shape_cast %147 : vector<1xf32> to vector<1x1xf32>
    %149 = arith.addf %148, %145 : vector<1x1xf32>
    %150 = arith.negf %149 : vector<1x1xf32>
    %151 = math.exp %150 : vector<1x1xf32>
    %cst_98 = arith.constant 1.000000e+00 : f32
    %152 = vector.broadcast %cst_98 : f32 to vector<1x1xf32>
    %153 = arith.addf %152, %151 : vector<1x1xf32>
    %154 = arith.divf %152, %153 : vector<1x1xf32>
    %c0_99 = arith.constant 0 : index
    %c0_100 = arith.constant 0 : index
    %c0_101 = arith.constant 0 : index
    %155 = vector.load %arg4[%c0_99, %c0_100, %c0_101] : memref<1x1x1xf32, #tpu.memory_space<vmem>>, vector<1x1x1xf32>
    %156 = vector.shape_cast %155 : vector<1x1x1xf32> to vector<1x1xf32>
    %157 = vector.shape_cast %154 : vector<1x1xf32> to vector<1x1x1xf32>
    tpu.vector_store %arg4[%c0_99, %c0_100, %c0_101], %157 {strides = array<i32>} : memref<1x1x1xf32, #tpu.memory_space<vmem>>, vector<1x1x1xf32>,
    return
  }
  func.func @transform_0(%arg0: i32) -> (i32, i32, i32) {
    %c0_i32 = arith.constant 0 : i32
    %c0_i32_0 = arith.constant 0 : i32
    %c0_i32_1 = arith.constant 0 : i32
    return %arg0, %c0_i32, %c0_i32_0 : i32, i32, i32
  }
  func.func @transform_1(%arg0: i32) -> (i32, i32) {
    %c0_i32 = arith.constant 0 : i32
    %c0_i32_0 = arith.constant 0 : i32
    %c0_i32_1 = arith.constant 0 : i32
    return %c0_i32, %c0_i32_0 : i32, i32
  }
  func.func @transform_2(%arg0: i32) -> (i32, i32) {
    %c0_i32 = arith.constant 0 : i32
    %c0_i32_0 = arith.constant 0 : i32
    %c0_i32_1 = arith.constant 0 : i32
    return %c0_i32, %c0_i32_0 : i32, i32
  }
  func.func @transform_3(%arg0: i32) -> (i32, i32, i32) {
    %c0_i32 = arith.constant 0 : i32
    %c0_i32_0 = arith.constant 0 : i32
    %c0_i32_1 = arith.constant 0 : i32
    return %arg0, %c0_i32, %c0_i32_0 : i32, i32, i32
  }
}

</mosaic_0001>

<bundles_post_ra>
// kernel: discriminator_forward.1
= control target key start
LH: loop header
LB: loop body
LE: loop exit
PB: predicated region body
PF: predicated region fallthrough
CT: control target
= control target key end

     0   :  { %s4363_s12 = smov 0   ;;  %s5159_s0 = inlined_call_operand.vmem [shape: f32[2,64,27], index: 0, kind: input, shape index: {}]   ;;  %s5160_s1 = inlined_call_operand.vmem [shape: f32[1088,128], index: 1, kind: input, shape index: {}]   ;;  %s5161_s2 = inlined_call_operand.vmem [shape: f32[288,64], index: 2, kind: input, shape index: {}]   ;;  %s5162_s3 = inlined_call_operand.vmem [shape: f32[2,1,1], index: 3, kind: output, shape index: {}]  }
   0x1 LB: > { %s3261_s13 = sadd.s32 4294967295, %s4330_s12   ;;  %p3265_p0 = scmp.ge.s32.totalorder %s4330_s12, 1  ;;  %s4330_s12 = sphi %s4363_s12, %s13_s12  }
   0x2   : > { %p137_p1 = scmp.lt.s32.totalorder %s4330_s12, 3 }
   0x4   : > { %p138_p2 = pnand %p3265_p0, %p137_p1 }
   0x5   : > { %v167_v0 = vld [vmem:[%s5160_s1] sm:$0xff] (!%p138_p2)  ;;  %v168_v1 = vld [vmem:[%s5160_s1 + $0x8] sm:$0xff] (!%p138_p2)  ;;  %v169_v2 = vld [vmem:[%s5160_s1 + $0x10] sm:$0xff] (!%p138_p2)  ;;  %vm209_vm0 = vcmask (!%p138_p2), 1042432   ;;  %p159_p3 = scmp.lt.s32.totalorder (!%p138_p2), %s3261_s13, 1  ;;  %vm4332_vm1 = vmmov (!%p138_p2), 1  }
   0x6   : > { %141 = sbr.rel (%p138_p2) target bundleno = 2319 (0x90f), region = 32  ;;  %v3928_v3 = vpack.c.bf16 (!%p138_p2), %v168_v1, %v167_v0  ;;  %v170_v4 = vld [vmem:[%s5160_s1 + $0x18] sm:$0x7] (!%p138_p2)  ;;  %vm3933_vm2 = vmpackc.low (!%p138_p2), %vm209_vm0, %vm4332_vm1  ;;  %vm184_vm3 = vcmask (!%p138_p2), 220160   ;;  %v342_v14 = vld [vmem:[%s5161_s2] sm:$0xff] (!%p138_p2)  ;;  %vm360_vm4 = vcmask (!%p138_p2), 523264  }
   0x7   : > { %v3932_v5 = vpack.c.bf16 (!%p138_p2), %v170_v4, %v169_v2  ;;  %v344_v15 = vld [vmem:[%s5161_s2 + $0x10] sm:$0xff] (!%p138_p2)  ;;  %v3268_v16 = vld [vmem:[%s5160_s1 + $0x20] ss:$0 sm:$0xff] (!%p138_p2)  ;;  %v343_v53 = vld [vmem:[%s5161_s2 + $0x8] sm:$0xff] (!%p138_p2)  ;;  %s4334_s18 = smov (!%p138_p2), 16   ;;  %s4335_s8 = smov (!%p138_p2), 32  }
   0x8   : > { %3929 = vmatprep.subr.bf16.mxu1 (!%p138_p2), %v3928_v3  ;;  %3654 = vmatprep.mubr.msk.f32.mxu0 (!%p138_p2), %vm360_vm4, %v344_v15  ;;  %v345_v54 = vld [vmem:[%s5161_s2 + $0x18] sm:$0xff] (!%p138_p2)  ;;  %v346_v55 = vld [vmem:[%s5161_s2 + $0x20] sm:$0xff] (!%p138_p2)  ;;  %v348_v56 = vld [vmem:[%s5161_s2 + $0x30] sm:$0xff] (!%p138_p2)  ;;  %s4336_s9 = smov (!%p138_p2), 48   ;;  %s4337_s28 = smov (!%p138_p2), 80   ;;  %vm1146_vm13 = vcmask (!%p138_p2), 130048  }
   0x9   : > { %3931 = vmatpush3.bf16.msra.mxu1 (!%p138_p2), %v3928_v3  ;;  %v347_v57 = vld [vmem:[%s5161_s2 + $0x28] sm:$0xff] (!%p138_p2)  ;;  %v349_v58 = vld [vmem:[%s5161_s2 + $0x38] sm:$0xff] (!%p138_p2)  ;;  %v350_v59 = vld [vmem:[%s5161_s2 + $0x40] sm:$0xff] (!%p138_p2)  ;;  %s4338_s29 = smov (!%p138_p2), 64   ;;  %s4339_s30 = smov (!%p138_p2), 112   ;;  %vm1149_vm14 = vcmask (!%p138_p2), 261120  }
   0xa   : > { %3934 = vmatprep.subr.msk.bf16.mxu1 (!%p138_p2), %vm3933_vm2, %v3932_v5  ;;  %v352_v60 = vld [vmem:[%s5161_s2 + $0x50] sm:$0xff] (!%p138_p2)  ;;  %v351_v61 = vld [vmem:[%s5161_s2 + $0x48] sm:$0xff] (!%p138_p2)  ;;  %v353_v62 = vld [vmem:[%s5161_s2 + $0x58] sm:$0xff] (!%p138_p2)  ;;  %s4340_s4 = smov (!%p138_p2), 96   ;;  %vm1152_vm15 = vcmask (!%p138_p2), 392192   ;;  %vm1157_vm0 = vcmask (!%p138_p2), 654336  }
   0xb   : > { %v354_v63 = vld [vmem:[%s5161_s2 + $0x60] sm:$0xff] (!%p138_p2)  ;;  %v356_v0 = vld [vmem:[%s5161_s2 + $0x70] sm:$0xff] (!%p138_p2)  ;;  %v355_v1 = vld [vmem:[%s5161_s2 + $0x68] sm:$0xff] (!%p138_p2)  ;;  %vm1160_vm1 = vcmask (!%p138_p2), 785408  }
   0xc   : > { %v357_v2 = vld [vmem:[%s5161_s2 + $0x78] sm:$0xff] (!%p138_p2)  ;;  %v358_v3 = vld [vmem:[%s5161_s2 + $0x80] sm:$0xff] (!%p138_p2)  ;;  %v359_v4 = vld [vmem:[%s5161_s2 + $0x88] sm:$0xff] (!%p138_p2) }
   0xd   : > { %s5164_s13 = smov (!%p159_p3, %s3261_s13), 1  ;;  %3937 = vmatpush3.bf16.msk.msra.mxu1 %vm3933_vm2, %v3932_v5  ;;  %v1166_v5 = vld [vmem:[%s5160_s1 + $0x28] sm:$0xff]  ;;  %v1169_v15 = vld [vmem:[%s5160_s1 + $0x40] sm:$0xff]  ;;  %vm1163_vm2 = vcmask 916480  }
   0xe   : > { %s3332_s22 = sshll.u32 %s5164_s13, 6  ;;  %s166_s11 = scalar_lea.vmem %s5162_s3, %s5164_s13 }
   0xf   : > { %s163_s25 = scalar_lea.vmem %s5159_s0, %s3332_s22 }
  0x10   : > { %v172_v6 = vld [vmem:[%s163_s25] sm:$0xff]  ;;  %v173_v7 = vld [vmem:[%s163_s25 + $0x8] sm:$0xff]  ;;  %v174_v8 = vld [vmem:[%s163_s25 + $0x10] sm:$0xff] }
  0x11   : > { %3607 = vmatprep.mubr.msk.f32.mxu1 %vm184_vm3, %v172_v6  ;;  %v175_v9 = vld [vmem:[%s163_s25 + $0x18] sm:$0xff]  ;;  %v176_v10 = vld [vmem:[%s163_s25 + $0x20] sm:$0xff]  ;;  %v177_v11 = vld [vmem:[%s163_s25 + $0x28] sm:$0xff] }
  0x12   : > { %3608 = vmatmul.mubr.msk.f32.vlgmr.msra.gmra.mrb[0].mxu1 %vm184_vm3, %v173_v7  ;;  %v178_v12 = vld [vmem:[%s163_s25 + $0x30] sm:$0xff]  ;;  %v179_v13 = vld [vmem:[%s163_s25 + $0x38] sm:$0xff]  ;;  %v4333_v7 = vmov 0.0|0.0  }
  0x13   : > { %3610 = vmatprep.mubr.msk.f32.mxu1 %vm184_vm3, %v174_v8  ;;  %v1167_v6 = vld [vmem:[%s5160_s1 + $0x30] sm:$0xff] }
  0x14   : > { %v4083_v8 = vpack.c.bf16 %v1167_v6, %v1166_v5 }
  0x16   : > { %3611 = vmatmul.mubr.msk.f32.gmra.mrb[2].mxu1 %vm184_vm3, %v175_v9 }
  0x17   : > { %3613 = vmatprep.mubr.msk.f32.mxu1 %vm184_vm3, %v176_v10 }
  0x1a   : > { %3614 = vmatmul.mubr.msk.f32.gmra.mrb[4].mxu1 %vm184_vm3, %v177_v11 }
  0x1b   : > { %3616 = vmatprep.mubr.msk.f32.mxu1 %vm184_vm3, %v178_v12 }
  0x1e   : > { %3617 = vmatmul.mubr.msk.f32.gmra.mrb[6].mxu1 %vm184_vm3, %v179_v13  ;;  %vm4341_vm3 = vmmov 0  }
  0x1f   : > { %3635 = vmatprep.mubr.msk.f32.mxu1 %vm360_vm4, %v342_v14  ;;  %v1168_v14 = vld [vmem:[%s5160_s1 + $0x38] sm:$0xff] }
  0xe5   : > { %v3609_v17 = vpop.f32.mrb[0].mxu1 }
  0xe6   : > { %v285_v18 = vadd.f32 %v3609_v17, %v3268_v16  ;;  %v279_v19 = vpop.f32.mrb[1].mxu1  ;;  %v1170_v17 = vld [vmem:[%s5160_s1 + $0x48] sm:$0xff] }
  0xe7   : > { %v280_v20 = vadd.f32 %v3268_v16, %v279_v19  ;;  %v1172_v19 = vld [vmem:[%s5160_s1 + $0x58] sm:$0xff] }
  0xe8   : > { %vm319_vm5 = vcmp.ge.f32.partialorder %v285_v18, 0.0  ;;  %v327_v21 = vmul.f32 0.2, %v285_v18 }
  0xe9   : > { %vm318_vm6 = vcmp.ge.f32.partialorder %v280_v20, 0.0  ;;  %v326_v22 = vmul.f32 0.2, %v280_v20  ;;  %v3612_v23 = vpop.f32.mrb[2].mxu1 }
  0xea   : > { %v335_v24 = vsel %vm319_vm5, %v285_v18, %v327_v21  ;;  %v295_v25 = vadd.f32 %v3612_v23, %v3268_v16  ;;  %v289_v26 = vpop.f32.mrb[3].mxu1  ;;  %v1171_v18 = vld [vmem:[%s5160_s1 + $0x50] sm:$0xff]  ;;  %v1173_v21 = vld [vmem:[%s5160_s1 + $0x60] sm:$0xff]  ;;  %v1174_v23 = vld [vmem:[%s5160_s1 + $0x68] sm:$0xff] }
  0xeb   : > { %v334_v27 = vsel %vm318_vm6, %v280_v20, %v326_v22  ;;  %v290_v28 = vadd.f32 %v3268_v16, %v289_v26  ;;  %v4089_v20 = vpack.c.bf16 %v1171_v18, %v1170_v17  ;;  %v4092_v22 = vpack.c.bf16 %v1173_v21, %v1172_v19 }
  0xec   : > { %v4408_v29 = vpack.c.bf16 %v335_v24, %v334_v27  ;;  %vm321_vm7 = vcmp.ge.f32.partialorder %v295_v25, 0.0  ;;  %v329_v30 = vmul.f32 0.2, %v295_v25  ;;  %v1175_v24 = vld [vmem:[%s5160_s1 + $0x70] sm:$0xff] }
  0xed   : > { %vm320_vm8 = vcmp.ge.f32.partialorder %v290_v28, 0.0  ;;  %v328_v31 = vmul.f32 0.2, %v290_v28  ;;  %v3615_v32 = vpop.f32.mrb[4].mxu1 }
  0xee   : > { %v337_v33 = vsel %vm321_vm7, %v295_v25, %v329_v30  ;;  %v305_v34 = vadd.f32 %v3615_v32, %v3268_v16  ;;  %v299_v35 = vpop.f32.mrb[5].mxu1  ;;  %3939 = vmatprep.subr.bf16.mxu1 %v4408_v29  ;;  %3955 = vmatprep.subr.bf16.mxu0 %v4408_v29  ;;  %v1176_v32 = vld [vmem:[%s5160_s1 + $0x78] sm:$0xff] }
  0xef   : > { %v336_v36 = vsel %vm320_vm8, %v290_v28, %v328_v31  ;;  %v300_v37 = vadd.f32 %v3268_v16, %v299_v35  ;;  %3941 = vmatpush3.bf16.msra.mxu1 %v4408_v29  ;;  %3957 = vmatpush3.bf16.msra.mxu0 %v4408_v29  ;;  %v1178_v35 = vld [vmem:[%s5160_s1 + $0x88] sm:$0xff]  ;;  %vm2188_vm8 = vcmask 519168  }
  0xf0   : > { %v4414_v38 = vpack.c.bf16 %v337_v33, %v336_v36  ;;  %vm323_vm9 = vcmp.ge.f32.partialorder %v305_v34, 0.0  ;;  %v331_v39 = vmul.f32 0.2, %v305_v34  ;;  %v1177_v33 = vld [vmem:[%s5160_s1 + $0x80] sm:$0xff]  ;;  %v1179_v36 = vld [vmem:[%s5160_s1 + $0x90] sm:$0xff] }
  0xf1   : > { %vm322_vm10 = vcmp.ge.f32.partialorder %v300_v37, 0.0  ;;  %v330_v40 = vmul.f32 0.2, %v300_v37  ;;  %v3618_v41 = vpop.f32.mrb[6].mxu1 }
  0xf2   : > { %v339_v42 = vsel %vm323_vm9, %v305_v34, %v331_v39  ;;  %v315_v43 = vadd.f32 %v3618_v41, %v3268_v16  ;;  %v309_v44 = vpop.f32.mrb[7].mxu1  ;;  %3943 = vmatprep.subr.bf16.mxu1 %v4414_v38  ;;  %3959 = vmatprep.subr.bf16.mxu0 %v4414_v38  ;;  %v4098_v34 = vpack.c.bf16 %v1177_v33, %v1176_v32  ;;  %v1181_v39 = vld [vmem:[%s5160_s1 + $0xa0] sm:$0xff]  ;;  %v1182_v41 = vld [vmem:[%s5160_s1 + $0xa8] sm:$0xff]  ;;  %vm2224_vm9 = vcmask 1043456  }
  0xf3   : > { %v338_v45 = vsel %vm322_vm10, %v300_v37, %v330_v40  ;;  %v310_v46 = vadd.f32 %v3268_v16, %v309_v44  ;;  %3945 = vmatpush3.bf16.msra.mxu1 %v4414_v38  ;;  %3961 = vmatpush3.bf16.msra.mxu0 %v4414_v38  ;;  %v4086_v16 = vpack.c.bf16 %v1169_v15, %v1168_v14  ;;  %vm2220_vm10 = vcmask 31744  }
  0xf4   : > { %v4420_v47 = vpack.c.bf16 %v339_v42, %v338_v45  ;;  %vm325_vm11 = vcmp.ge.f32.partialorder %v315_v43, 0.0  ;;  %v333_v48 = vmul.f32 0.2, %v315_v43  ;;  %v4101_v37 = vpack.c.bf16 %v1179_v36, %v1178_v35  ;;  %v1183_v42 = vld [vmem:[%s5160_s1 + $0xb0] sm:$0xff] }
  0xf5   : > { %vm324_vm12 = vcmp.ge.f32.partialorder %v310_v46, 0.0  ;;  %v332_v49 = vmul.f32 0.2, %v310_v46 }
  0xf6   : > { %v341_v50 = vsel %vm325_vm11, %v315_v43, %v333_v48  ;;  %3947 = vmatprep.subr.bf16.mxu1 %v4420_v47  ;;  %3963 = vmatprep.subr.bf16.mxu0 %v4420_v47 }
  0xf7   : > { %v340_v51 = vsel %vm324_vm12, %v310_v46, %v332_v49  ;;  %3949 = vmatpush3.bf16.msra.mxu1 %v4420_v47  ;;  %3965 = vmatpush3.bf16.msra.mxu0 %v4420_v47  ;;  %vm3212_vm12 = vcmask 0  }
  0xf8   : > { %v4426_v52 = vpack.c.bf16 %v341_v50, %v340_v51 }
  0xfa   : > { %3951 = vmatprep.subr.bf16.mxu1 %v4426_v52  ;;  %3967 = vmatprep.subr.bf16.mxu0 %v4426_v52 }
  0xfb   : > { %3953 = vmatpush3.bf16.msra.mxu1 %v4426_v52  ;;  %3969 = vmatpush3.bf16.msra.mxu0 %v4426_v52 }
  0xfc   : > { %3971 = vmatprep.subr.bf16.mxu1 %v4408_v29  ;;  %3987 = vmatprep.subr.bf16.mxu0 %v4408_v29 }
  0xfe   : > { %3636 = vmatmul.mubr.msk.f32.vlgmr.msra.gmra.mrb[8].mxu1 %vm360_vm4, %v343_v53  ;;  %3655 = vmatmul.mubr.msk.f32.vlgmr.msra.gmra.mrb[0].mxu0 %vm360_vm4, %v345_v54 }
  0xff   : > { %3973 = vmatpush3.bf16.msra.mxu1 %v4408_v29  ;;  %3989 = vmatpush3.bf16.msra.mxu0 %v4408_v29 }
 0x100   : > { %3975 = vmatprep.subr.bf16.mxu1 %v4414_v38  ;;  %3991 = vmatprep.subr.bf16.mxu0 %v4414_v38 }
 0x101   : > { %3673 = vmatprep.mubr.msk.f32.mxu1 %vm360_vm4, %v346_v55  ;;  %3692 = vmatprep.mubr.msk.f32.mxu0 %vm360_vm4, %v348_v56 }
 0x103   : > { %3977 = vmatpush3.bf16.msra.mxu1 %v4414_v38  ;;  %3993 = vmatpush3.bf16.msra.mxu0 %v4414_v38 }
 0x104   : > { %3979 = vmatprep.subr.bf16.mxu1 %v4420_v47  ;;  %3995 = vmatprep.subr.bf16.mxu0 %v4420_v47 }
 0x107   : > { %3981 = vmatpush3.bf16.msra.mxu1 %v4420_v47  ;;  %3997 = vmatpush3.bf16.msra.mxu0 %v4420_v47 }
 0x108   : > { %3983 = vmatprep.subr.bf16.mxu1 %v4426_v52  ;;  %3999 = vmatprep.subr.bf16.mxu0 %v4426_v52 }
 0x10b   : > { %3985 = vmatpush3.bf16.msra.mxu1 %v4426_v52  ;;  %4001 = vmatpush3.bf16.msra.mxu0 %v4426_v52 }
 0x10c   : > { %4003 = vmatprep.subr.bf16.mxu1 %v4408_v29  ;;  %4019 = vmatprep.subr.bf16.mxu0 %v4408_v29 }
 0x10e   : > { %3674 = vmatmul.mubr.msk.f32.vlgmr.msra.gmra.mrb[10].mxu1 %vm360_vm4, %v347_v57  ;;  %3693 = vmatmul.mubr.msk.f32.vlgmr.msra.gmra.mrb[2].mxu0 %vm360_vm4, %v349_v58 }
 0x10f   : > { %4005 = vmatpush3.bf16.msra.mxu1 %v4408_v29  ;;  %4021 = vmatpush3.bf16.msra.mxu0 %v4408_v29 }
 0x110   : > { %4007 = vmatprep.subr.bf16.mxu1 %v4414_v38  ;;  %4023 = vmatprep.subr.bf16.mxu0 %v4414_v38 }
 0x111   : > { %3711 = vmatprep.mubr.msk.f32.mxu1 %vm360_vm4, %v350_v59  ;;  %3730 = vmatprep.mubr.msk.f32.mxu0 %vm360_vm4, %v352_v60 }
 0x113   : > { %4009 = vmatpush3.bf16.msra.mxu1 %v4414_v38  ;;  %4025 = vmatpush3.bf16.msra.mxu0 %v4414_v38 }
 0x114   : > { %4011 = vmatprep.subr.bf16.mxu1 %v4420_v47  ;;  %4027 = vmatprep.subr.bf16.mxu0 %v4420_v47 }
 0x117   : > { %4013 = vmatpush3.bf16.msra.mxu1 %v4420_v47  ;;  %4029 = vmatpush3.bf16.msra.mxu0 %v4420_v47 }
 0x118   : > { %4015 = vmatprep.subr.bf16.mxu1 %v4426_v52  ;;  %4031 = vmatprep.subr.bf16.mxu0 %v4426_v52 }
 0x11b   : > { %4017 = vmatpush3.bf16.msra.mxu1 %v4426_v52  ;;  %4033 = vmatpush3.bf16.msra.mxu0 %v4426_v52 }
 0x11c   : > { %4035 = vmatprep.subr.bf16.mxu1 %v4408_v29  ;;  %4051 = vmatprep.subr.bf16.mxu0 %v4408_v29 }
 0x11e   : > { %3712 = vmatmul.mubr.msk.f32.vlgmr.msra.gmra.mrb[12].mxu1 %vm360_vm4, %v351_v61  ;;  %3731 = vmatmul.mubr.msk.f32.vlgmr.msra.gmra.mrb[4].mxu0 %vm360_vm4, %v353_v62 }
 0x11f   : > { %4037 = vmatpush3.bf16.msra.mxu1 %v4408_v29  ;;  %4053 = vmatpush3.bf16.msra.mxu0 %v4408_v29 }
 0x120   : > { %4039 = vmatprep.subr.bf16.mxu1 %v4414_v38  ;;  %4055 = vmatprep.subr.bf16.mxu0 %v4414_v38 }
 0x121   : > { %3749 = vmatprep.mubr.msk.f32.mxu1 %vm360_vm4, %v354_v63  ;;  %3768 = vmatprep.mubr.msk.f32.mxu0 %vm360_vm4, %v356_v0 }
 0x123   : > { %4041 = vmatpush3.bf16.msra.mxu1 %v4414_v38  ;;  %4057 = vmatpush3.bf16.msra.mxu0 %v4414_v38 }
 0x124   : > { %4043 = vmatprep.subr.bf16.mxu1 %v4420_v47  ;;  %4059 = vmatprep.subr.bf16.mxu0 %v4420_v47 }
 0x127   : > { %4045 = vmatpush3.bf16.msra.mxu1 %v4420_v47  ;;  %4061 = vmatpush3.bf16.msra.mxu0 %v4420_v47 }
 0x128   : > { %4047 = vmatprep.subr.bf16.mxu1 %v4426_v52  ;;  %4063 = vmatprep.subr.bf16.mxu0 %v4426_v52 }
 0x12b   : > { %4049 = vmatpush3.bf16.msra.mxu1 %v4426_v52  ;;  %4065 = vmatpush3.bf16.msra.mxu0 %v4426_v52 }
 0x12c   : > { %4067 = vmatprep.subr.bf16.mxu1 %v4408_v29  ;;  %4082 = vmatprep.subr.bf16.mxu0 %v4333_v7 }
 0x12e   : > { %3750 = vmatmul.mubr.msk.f32.vlgmr.msra.gmra.mrb[14].mxu1 %vm360_vm4, %v355_v1  ;;  %3769 = vmatmul.mubr.msk.f32.vlgmr.msra.gmra.mrb[6].mxu0 %vm360_vm4, %v357_v2 }
 0x12f   : > { %4069 = vmatpush3.bf16.msra.mxu1 %v4408_v29  ;;  %3787 = vmatprep.mubr.msk.f32.mxu1 %vm360_vm4, %v358_v3  ;;  %v4095_v29 = vpack.c.bf16 %v1175_v24, %v1174_v23  ;;  %v4342_v24 = vmov 0.0  }
 0x130   : > { %4071 = vmatprep.subr.bf16.mxu1 %v4414_v38  ;;  %4084 = vmatpush1.bf16.msra.mxu0 %v4083_v8 }
 0x131   : > { %4085 = vmatprep.subr.bf16.mxu0 %v4333_v7 }
 0x133   : > { %4073 = vmatpush3.bf16.msra.mxu1 %v4414_v38  ;;  %v1180_v38 = vld [vmem:[%s5160_s1 + $0x98] sm:$0xff] }
 0x134   : > { %4075 = vmatprep.subr.bf16.mxu1 %v4420_v47  ;;  %4087 = vmatpush1.bf16.msra.mxu0 %v4086_v16  ;;  %v4104_v40 = vpack.c.bf16 %v1181_v39, %v1180_v38 }
 0x135   : > { %4088 = vmatprep.subr.bf16.mxu0 %v4333_v7 }
 0x137   : > { %4077 = vmatpush3.bf16.msra.mxu1 %v4420_v47  ;;  %v4107_v47 = vpack.c.bf16 %v1183_v42, %v1182_v41 }
 0x138   : > { %4079 = vmatprep.subr.bf16.mxu1 %v4426_v52  ;;  %4090 = vmatpush1.bf16.msra.mxu0 %v4089_v20 }
 0x139   : > { %4091 = vmatprep.subr.bf16.mxu0 %v4333_v7 }
 0x13b   : > { %4081 = vmatpush3.bf16.msra.mxu1 %v4426_v52 }
 0x13c   : > { %4109 = vmatprep.subr.bf16.mxu1 %v4333_v7  ;;  %4093 = vmatpush1.bf16.msra.mxu0 %v4092_v22 }
 0x13d   : > { %4094 = vmatprep.subr.bf16.mxu0 %v4333_v7 }
 0x13e   : > { %3788 = vmatmul.mubr.msk.f32.vlgmr.msra.gmra.mrb[16].mxu1 %vm360_vm4, %v359_v4 }
 0x13f   : > { %3794 = vmatprep.mubr.msk.f32.mxu1 %vm4341_vm3, %v4342_v24 }
 0x140   : > { %4096 = vmatpush1.bf16.msra.mxu0 %v4095_v29 }
 0x141   : > { %4097 = vmatprep.subr.bf16.mxu0 %v4333_v7 }
 0x144   : > { %4099 = vmatpush1.bf16.msra.mxu0 %v4098_v34 }
 0x145   : > { %4100 = vmatprep.subr.bf16.mxu0 %v4333_v7 }
 0x148   : > { %4102 = vmatpush1.bf16.msra.mxu0 %v4101_v37 }
 0x149   : > { %4103 = vmatprep.subr.bf16.mxu0 %v4333_v7 }
 0x14c   : > { %4105 = vmatpush1.bf16.msra.mxu0 %v4104_v40 }
 0x14d   : > { %4106 = vmatprep.subr.bf16.mxu0 %v4333_v7 }
 0x150   : > { %4108 = vmatpush1.bf16.msra.mxu0 %v4107_v47 }
 0x151   : > { %4133 = vmatprep.subr.bf16.mxu0 %v4333_v7 }
 0x1d1   : > { %v4561_v9 = vpop.f32.mrb[8].mxu1  ;;  %v3656_v10 = vpop.f32.mrb[0].mxu0 }
 0x1d2   : > { %v4563_v11 = vpop.f32.mrb[9].mxu1  ;;  %v514_v12 = vpop.f32.mrb[1].mxu0 }
 0x1d3   : > { %v4269_v13 = vpack.i.bf16 %v3656_v10, %v514_v12 }
 0x1d5   : > { %4270 = vrot.lane.b32.xlu0 %v4269_v13, %s4334_s18 }
 0x1e1   : > { %v3675_v25 = vpop.f32.mrb[10].mxu1  ;;  %v3694_v26 = vpop.f32.mrb[2].mxu0 }
 0x1e2   : > { %v595_v27 = vpop.f32.mrb[11].mxu1  ;;  %v676_v28 = vpop.f32.mrb[3].mxu0 }
 0x1e3   : > { %v4274_v30 = vpack.i.bf16 %v3675_v25, %v595_v27  ;;  %v4279_v31 = vpack.i.bf16 %v3694_v26, %v676_v28  ;;  %v3296_v25 = vld [vmem:[%s5160_s1 + $0xb8] ss:$0 sm:$0xff] }
 0x1e5   : > { %4275 = vrot.lane.b32.xlu0 %v4274_v30, %s4335_s8  ;;  %4280 = vrot.lane.b32.xlu1 %v4279_v31, %s4336_s9 }
 0x1f1   : > { %v3713_v43 = vpop.f32.mrb[12].mxu1  ;;  %v3732_v44 = vpop.f32.mrb[4].mxu0 }
 0x1f2   : > { %v757_v45 = vpop.f32.mrb[13].mxu1  ;;  %v838_v46 = vpop.f32.mrb[5].mxu0 }
 0x1f3   : > { %v4284_v48 = vpack.i.bf16 %v3713_v43, %v757_v45  ;;  %1124 = vrot.lane.b32.xlu0 %v838_v46, %s4337_s28 }
 0x1f5   : > { %4285 = vrot.lane.b32.xlu1 %v4284_v48, %s4338_s29 }
 0x201   : > { %v3751_v49 = vpop.f32.mrb[14].mxu1  ;;  %v3770_v50 = vpop.f32.mrb[6].mxu0 }
 0x202   : > { %v919_v51 = vpop.f32.mrb[15].mxu1  ;;  %v1000_v52 = vpop.f32.mrb[7].mxu0 }
 0x203   : > { %1140 = vrot.lane.b32.xlu0 %v1000_v52, %s4339_s30  ;;  %1132 = vrot.lane.b32.xlu1 %v919_v51, %s4340_s4 }
 0x207   : > { %1134 = vrot.lane.b32.xlu0 %v3751_v49, %s4340_s4  ;;  %1126 = vrot.lane.b32.xlu1 %v3732_v44, %s4337_s28 }
 0x20b   : > { %1142 = vrot.lane.b32.xlu1 %v3770_v50, %s4339_s30 }
 0x211   : > { %v3789_v53 = vpop.f32.mrb[16].mxu1 }
 0x212   : > { %v1081_v54 = vpop.f32.mrb[17].mxu1 }
 0x213   : > { %3297 = vmatprep.mubr.msk.f32.mxu0 %vm1146_vm13, %v1081_v54 }
 0x247   : > { %v4271_v55 = vpop.permute.xlu0 %4270 }
 0x248   : > { %v4272_v58 = vunpack.i.l.bf16 %v4271_v55  ;;  %v4273_v1 = vunpack.i.h.bf16 %v4271_v55 }
 0x24a   : > { %v1147_v61 = vsel %vm1146_vm13, %v4563_v11, %v4272_v58  ;;  %v1148_v6 = vsel %vm1146_vm13, %v4561_v9, %v4273_v1  ;;  %v1305_v1 = vld [vmem:[%s5161_s2 + $0x90] sm:$0xf] }
 0x257   : > { %v4276_v56 = vpop.permute.xlu0 %4275  ;;  %v4281_v57 = vpop.permute.xlu1 %4280 }
 0x258   : > { %v4277_v59 = vunpack.i.l.bf16 %v4276_v56  ;;  %v4282_v62 = vunpack.i.l.bf16 %v4281_v57  ;;  %v4278_v2 = vunpack.i.h.bf16 %v4276_v56  ;;  %v4283_v8 = vunpack.i.h.bf16 %v4281_v57 }
 0x25a   : > { %v1150_v63 = vsel %vm1149_vm14, %v1147_v61, %v4277_v59  ;;  %v1151_v10 = vsel %vm1149_vm14, %v1148_v6, %v4278_v2  ;;  %v1313_v2 = vld [vmem:[%s5161_s2 + $0xd0] sm:$0xf] }
 0x25b   : > { %v1153_v4 = vsel %vm1152_vm15, %v1150_v63, %v4282_v62  ;;  %v1154_v17 = vsel %vm1152_vm15, %v1151_v10, %v4283_v8  ;;  %v1309_v6 = vld [vmem:[%s5161_s2 + $0xb0] sm:$0xf]  ;;  %v1310_v8 = vld [vmem:[%s5161_s2 + $0xb8] sm:$0xf]  ;;  %v1311_v10 = vld [vmem:[%s5161_s2 + $0xc0] sm:$0xf] }
 0x265   : > { %v1125_v3 = vpop.permute.xlu0 %1124 }
 0x267   : > { %v4286_v60 = vpop.permute.xlu1 %4285 }
 0x268   : > { %v4287_v0 = vunpack.i.l.bf16 %v4286_v60  ;;  %v4288_v11 = vunpack.i.h.bf16 %v4286_v60 }
 0x26a   : > { %v1155_v5 = vsel %vm360_vm4, %v1153_v4, %v4287_v0  ;;  %v1156_v18 = vsel %vm360_vm4, %v1154_v17, %v4288_v11  ;;  %v1307_v4 = vld [vmem:[%s5161_s2 + $0xa0] sm:$0xf]  ;;  %v1312_v11 = vld [vmem:[%s5161_s2 + $0xc8] sm:$0xf]  ;;  %v2019_v17 = vld [vmem:[%s5160_s1 + $0x150] sm:$0xff] }
 0x26b   : > { %v1158_v12 = vsel %vm1157_vm0, %v1155_v5, %v1125_v3  ;;  %v1306_v3 = vld [vmem:[%s5161_s2 + $0x98] sm:$0xf]  ;;  %v1308_v5 = vld [vmem:[%s5161_s2 + $0xa8] sm:$0xf] }
 0x275   : > { %v1141_v13 = vpop.permute.xlu0 %1140  ;;  %v1133_v14 = vpop.permute.xlu1 %1132 }
 0x276   : > { %v1161_v15 = vsel %vm1160_vm1, %v1158_v12, %v1133_v14  ;;  %v2017_v12 = vld [vmem:[%s5160_s1 + $0x140] sm:$0xff] }
 0x277   : > { %v1164_v16 = vsel %vm1163_vm2, %v1161_v15, %v1141_v13  ;;  %v2018_v13 = vld [vmem:[%s5160_s1 + $0x148] sm:$0xff]  ;;  %v2001_v14 = vld [vmem:[%s5160_s1 + $0xc0] sm:$0xff] }
 0x278   : > { %1260 = vmatmul.mubr.f32.vlgmr.msra.gmra.mrb[8].mxu0 %v1164_v16  ;;  %v4136_v15 = vpack.c.bf16 %v2018_v13, %v2017_v12  ;;  %v2002_v16 = vld [vmem:[%s5160_s1 + $0xc8] sm:$0xff]  ;;  %v2035_v12 = vld [vmem:[%s5160_s1 + $0x1d0] sm:$0xff]  ;;  %v2036_v13 = vld [vmem:[%s5160_s1 + $0x1d8] sm:$0xff] }
 0x279   : > { %v1127_v19 = vpop.permute.xlu1 %1126  ;;  %3298 = vmatprep.mubr.msk.f32.mxu0 %vm1146_vm13, %v3789_v53  ;;  %v1135_v9 = vpop.permute.xlu0 %1134 }
 0x27a   : > { %v1159_v20 = vsel %vm1157_vm0, %v1156_v18, %v1127_v19  ;;  %v2020_v18 = vld [vmem:[%s5160_s1 + $0x158] sm:$0xff]  ;;  %v4138_v19 = vpack.c.bf16 %v2002_v16, %v2001_v14  ;;  %v4172_v16 = vpack.c.bf16 %v2036_v13, %v2035_v12  ;;  %v2213_v13 = vld [vmem:[%s5161_s2 + $0xe8] sm:$0x1] }
 0x27b   : > { %v1162_v22 = vsel %vm1160_vm1, %v1159_v20, %v1135_v9  ;;  %v4140_v9 = vpack.c.bf16 %v2020_v18, %v2019_v17  ;;  %v2003_v20 = vld [vmem:[%s5160_s1 + $0xd0] sm:$0xff]  ;;  %v2219_v12 = vld [vmem:[%s5161_s2 + $0x118] sm:$0x1] }
 0x27d   : > { %v1143_v21 = vpop.permute.xlu1 %1142 }
 0x27e   : > { %v1165_v23 = vsel %vm1163_vm2, %v1162_v22, %v1143_v21  ;;  %v2004_v21 = vld [vmem:[%s5160_s1 + $0xd8] sm:$0xff]  ;;  %v2021_v22 = vld [vmem:[%s5160_s1 + $0x160] sm:$0xff] }
 0x27f   : > { %1265 = vmatmul.mubr.f32.gmra.mrb[10].mxu0 %v1165_v23  ;;  %v2022_v23 = vld [vmem:[%s5160_s1 + $0x168] sm:$0xff] }
 0x280   : > { %3850 = vmatprep.mubr.msk.f32.mxu0 %vm4341_vm3, %v4342_v24 }
 0x34b   : > { %v1261_v26 = vpop.f32.mrb[8].mxu0 }
 0x34c   : > { %v1263_v27 = vpop.f32.mrb[9].mxu0  ;;  %v1262_v28 = vadd.f32 %v3296_v25, %v1261_v26  ;;  %v4144_v26 = vpack.c.bf16 %v2022_v23, %v2021_v22 }
 0x34d   : > { %v2005_v27 = vld [vmem:[%s5160_s1 + $0xe0] sm:$0xff] }
 0x34e   : > { %v1272_v29 = vmul.f32 0.2, %v1262_v28  ;;  %vm1270_vm5 = vcmp.ge.f32.partialorder %v1262_v28, 0.0 }
 0x350   : > { %v1274_v33 = vsel %vm1270_vm5, %v1262_v28, %v1272_v29  ;;  %v2006_v28 = vld [vmem:[%s5160_s1 + $0xe8] sm:$0xff]  ;;  %v2023_v29 = vld [vmem:[%s5160_s1 + $0x170] sm:$0xff] }
 0x351   : > { %v1276_v36 = vsel %vm1149_vm14, %v1274_v33, 0.0 }
 0x352   : > { %v1266_v30 = vpop.f32.mrb[10].mxu0 }
 0x353   : > { %v1267_v31 = vadd.f32 %v3296_v25, %v1266_v30  ;;  %v1268_v32 = vpop.f32.mrb[11].mxu0  ;;  %v4142_v25 = vpack.c.bf16 %v2004_v21, %v2003_v20  ;;  %v2024_v30 = vld [vmem:[%s5160_s1 + $0x178] sm:$0xff] }
 0x354   : > { %v4148_v32 = vpack.c.bf16 %v2024_v30, %v2023_v29 }
 0x355   : > { %vm1271_vm6 = vcmp.ge.f32.partialorder %v1267_v31, 0.0  ;;  %v1273_v34 = vmul.f32 0.2, %v1267_v31 }
 0x357   : > { %v1275_v35 = vsel %vm1271_vm6, %v1267_v31, %v1273_v34  ;;  %v4146_v31 = vpack.c.bf16 %v2006_v28, %v2005_v27  ;;  %v2008_v34 = vld [vmem:[%s5160_s1 + $0xf8] sm:$0xff] }
 0x358   : > { %v1277_v37 = vsel %vm1149_vm14, %v1275_v35, 0.0 }
 0x359   : > { %v1278_v38 = vadd.f32 %v1277_v37, %v1276_v36  ;;  %v2026_v36 = vld [vmem:[%s5160_s1 + $0x188] sm:$0xff] }
 0x35b   : > { %v1279_v39 = vrot.slane %v1278_v38, 4 }
 0x35d   : > { %v1280_v40 = vadd.f32 %v1279_v39, %v1278_v38  ;;  %v2009_v39 = vld [vmem:[%s5160_s1 + $0x100] sm:$0xff] }
 0x35f   : > { %v1281_v41 = vrot.slane %v1280_v40, 2 }
 0x361   : > { %v1282_v42 = vadd.f32 %v1281_v41, %v1280_v40  ;;  %v2010_v40 = vld [vmem:[%s5160_s1 + $0x108] sm:$0xff] }
 0x362   : > { %v4154_v41 = vpack.c.bf16 %v2010_v40, %v2009_v39 }
 0x363   : > { %v1283_v43 = vrot.slane %v1282_v42, 1 }
 0x365   : > { %v1284_v44 = vadd.f32 %v1283_v43, %v1282_v42 }
 0x367   : > { %v1286_v45 = vmul.f32 0.0625, %v1284_v44 }
 0x369   : > { %v1287_v46 = vsub.f32 %v1274_v33, %v1286_v45  ;;  %v1288_v47 = vsub.f32 %v1275_v35, %v1286_v45  ;;  %v2007_v33 = vld [vmem:[%s5160_s1 + $0xf0] sm:$0xff]  ;;  %v2025_v35 = vld [vmem:[%s5160_s1 + $0x180] sm:$0xff] }
 0x36a   : > { %v4150_v37 = vpack.c.bf16 %v2008_v34, %v2007_v33  ;;  %v4152_v38 = vpack.c.bf16 %v2026_v36, %v2025_v35 }
 0x36b   : > { %v1289_v48 = vmul.f32 %v1287_v46, %v1287_v46  ;;  %v1290_v49 = vmul.f32 %v1288_v47, %v1288_v47 }
 0x36d   : > { %v1291_v50 = vsel %vm1149_vm14, %v1289_v48, 0.0  ;;  %v1292_v51 = vsel %vm1149_vm14, %v1290_v49, 0.0 }
 0x36e   : > { %v1293_v52 = vadd.f32 %v1292_v51, %v1291_v50  ;;  %v2011_v50 = vld [vmem:[%s5160_s1 + $0x110] sm:$0xff]  ;;  %v2012_v51 = vld [vmem:[%s5160_s1 + $0x118] sm:$0xff] }
 0x370   : > { %v1294_v53 = vrot.slane %v1293_v52, 4 }
 0x372   : > { %v1295_v54 = vadd.f32 %v1294_v53, %v1293_v52  ;;  %v4158_v53 = vpack.c.bf16 %v2012_v51, %v2011_v50 }
 0x374   : > { %v1296_v55 = vrot.slane %v1295_v54, 2 }
 0x376   : > { %v1297_v56 = vadd.f32 %v1296_v55, %v1295_v54  ;;  %v2029_v54 = vld [vmem:[%s5160_s1 + $0x1a0] sm:$0xff]  ;;  %v2030_v55 = vld [vmem:[%s5160_s1 + $0x1a8] sm:$0xff] }
 0x378   : > { %v1298_v57 = vrot.slane %v1297_v56, 1 }
 0x37a   : > { %v1299_v58 = vadd.f32 %v1298_v57, %v1297_v56  ;;  %v4160_v57 = vpack.c.bf16 %v2030_v55, %v2029_v54 }
 0x37c   : > { %v1300_v59 = vmul.f32 0.0625, %v1299_v58  ;;  %v2013_v58 = vld [vmem:[%s5160_s1 + $0x120] sm:$0xff] }
 0x37e   : > { %v1301_v60 = vadd.f32 0.8, %v1300_v59  ;;  %v2014_v59 = vld [vmem:[%s5160_s1 + $0x128] sm:$0xff] }
 0x380   : > { %4314 = vrsqrt.f32 %v1301_v60 }
 0x38a   : > { %v4315_v61 = vpop.eup %4314 }
 0x38b   : > { %v1303_v62 = vmul.f32 %v4315_v61, %v1287_v46  ;;  %v1304_v63 = vmul.f32 %v4315_v61, %v1288_v47  ;;  %v2027_v46 = vld [vmem:[%s5160_s1 + $0x190] sm:$0xff]  ;;  %v2028_v47 = vld [vmem:[%s5160_s1 + $0x198] sm:$0xff]  ;;  %v4162_v61 = vpack.c.bf16 %v2014_v59, %v2013_v58 }
 0x38c   : > { %v4156_v49 = vpack.c.bf16 %v2028_v47, %v2027_v46 }
 0x38d   : > { %v4110_v0 = vpack.c.bf16 %v1304_v63, %v1303_v62  ;;  %v2031_v62 = vld [vmem:[%s5160_s1 + $0x1b0] sm:$0xff]  ;;  %v2032_v63 = vld [vmem:[%s5160_s1 + $0x1b8] sm:$0xff] }
 0x38f   : > { %4111 = vmatpush3.bf16.msra.mxu1 %v4110_v0  ;;  %4135 = vmatpush3.bf16.msra.mxu0 %v4110_v0 }
 0x390   : > { %4112 = vmatprep.subr.bf16.mxu1 %v4333_v7  ;;  %4168 = vmatprep.subr.bf16.mxu0 %v4333_v7 }
 0x392   : > { %3795 = vmatmul.mubr.msk.f32.vlgmr.msra.gmra.mrb[18].mxu1 %vm1146_vm13, %v1305_v1  ;;  %3851 = vmatmul.mubr.msk.f32.vlgmr.msra.gmra.mrb[12].mxu0 %vm1146_vm13, %v1313_v2  ;;  %v4164_v1 = vpack.c.bf16 %v2032_v63, %v2031_v62  ;;  %v2015_v2 = vld [vmem:[%s5160_s1 + $0x130] sm:$0xff] }
 0x393   : > { %4114 = vmatpush3.bf16.msra.mxu1 %v4110_v0  ;;  %3801 = vmatprep.mubr.msk.f32.mxu1 %vm4341_vm3, %v4342_v24 }
 0x394   : > { %4115 = vmatprep.subr.bf16.mxu1 %v4333_v7  ;;  %3861 = vmatprep.mubr.msk.f32.mxu0 %vm4341_vm3, %v4342_v24 }
 0x396   : > { %3802 = vmatmul.mubr.msk.f32.vlgmr.msra.gmra.mrb[20].mxu1 %vm1146_vm13, %v1306_v3  ;;  %v2016_v3 = vld [vmem:[%s5160_s1 + $0x138] sm:$0xff] }
 0x397   : > { %4117 = vmatpush3.bf16.msra.mxu1 %v4110_v0  ;;  %3808 = vmatprep.mubr.msk.f32.mxu1 %vm4341_vm3, %v4342_v24 }
 0x398   : > { %4118 = vmatprep.subr.bf16.mxu1 %v4333_v7 }
 0x39a   : > { %3809 = vmatmul.mubr.msk.f32.vlgmr.msra.gmra.mrb[22].mxu1 %vm1146_vm13, %v1307_v4  ;;  %v2033_v4 = vld [vmem:[%s5160_s1 + $0x1c0] sm:$0xff] }
 0x39b   : > { %4120 = vmatpush3.bf16.msra.mxu1 %v4110_v0  ;;  %3815 = vmatprep.mubr.msk.f32.mxu1 %vm4341_vm3, %v4342_v24 }
 0x39c   : > { %4121 = vmatprep.subr.bf16.mxu1 %v4333_v7 }
 0x39e   : > { %3816 = vmatmul.mubr.msk.f32.vlgmr.msra.gmra.mrb[24].mxu1 %vm1146_vm13, %v1308_v5 }
 0x39f   : > { %4123 = vmatpush3.bf16.msra.mxu1 %v4110_v0  ;;  %3822 = vmatprep.mubr.msk.f32.mxu1 %vm4341_vm3, %v4342_v24 }
 0x3a0   : > { %4124 = vmatprep.subr.bf16.mxu1 %v4333_v7 }
 0x3a2   : > { %3823 = vmatmul.mubr.msk.f32.vlgmr.msra.gmra.mrb[26].mxu1 %vm1146_vm13, %v1309_v6  ;;  %v4166_v6 = vpack.c.bf16 %v2016_v3, %v2015_v2 }
 0x3a3   : > { %4126 = vmatpush3.bf16.msra.mxu1 %v4110_v0  ;;  %3829 = vmatprep.mubr.msk.f32.mxu1 %vm4341_vm3, %v4342_v24 }
 0x3a4   : > { %4127 = vmatprep.subr.bf16.mxu1 %v4333_v7 }
 0x3a6   : > { %3830 = vmatmul.mubr.msk.f32.vlgmr.msra.gmra.mrb[28].mxu1 %vm1146_vm13, %v1310_v8  ;;  %v2034_v8 = vld [vmem:[%s5160_s1 + $0x1c8] sm:$0xff] }
 0x3a7   : > { %4129 = vmatpush3.bf16.msra.mxu1 %v4110_v0  ;;  %3836 = vmatprep.mubr.msk.f32.mxu1 %vm4341_vm3, %v4342_v24 }
 0x3a8   : > { %4130 = vmatprep.subr.bf16.mxu1 %v4333_v7 }
 0x3aa   : > { %3837 = vmatmul.mubr.msk.f32.vlgmr.msra.gmra.mrb[30].mxu1 %vm1146_vm13, %v1311_v10  ;;  %v4169_v10 = vpack.c.bf16 %v2034_v8, %v2033_v4  ;;  %v2211_v8 = vld [vmem:[%s5161_s2 + $0xd8] sm:$0x1] }
 0x3ab   : > { %4132 = vmatpush3.bf16.msra.mxu1 %v4110_v0  ;;  %3843 = vmatprep.mubr.msk.f32.mxu1 %vm4341_vm3, %v4342_v24 }
 0x3ac   : > { %4137 = vmatprep.subr.bf16.mxu1 %v4136_v15  ;;  %4170 = vmatpush3.bf16.msra.mxu0 %v4169_v10  ;;  %v2217_v10 = vld [vmem:[%s5161_s2 + $0x108] sm:$0x1] }
 0x3ad   : > { %4171 = vmatprep.subr.bf16.mxu0 %v4333_v7 }
 0x3ae   : > { %3844 = vmatmul.mubr.msk.f32.vlgmr.msra.gmra.mrb[32].mxu1 %vm1146_vm13, %v1312_v11 }
 0x3af   : > { %4139 = vmatpush3.bf16.msra.mxu1 %v4138_v19 }
 0x3b0   : > { %4141 = vmatprep.subr.bf16.mxu1 %v4140_v9  ;;  %4173 = vmatpush3.bf16.msra.mxu0 %v4172_v16  ;;  %v2216_v16 = vld [vmem:[%s5161_s2 + $0x100] sm:$0x1] }
 0x3b1   : > { %3864 = vmatprep.subr.mxu0 %v4342_v24 }
 0x3b3   : > { %4143 = vmatpush3.bf16.msra.mxu1 %v4142_v25 }
 0x3b4   : > { %4145 = vmatprep.subr.bf16.mxu1 %v4144_v26 }
 0x3b7   : > { %4147 = vmatpush3.bf16.msra.mxu1 %v4146_v31 }
 0x3b8   : > { %4149 = vmatprep.subr.bf16.mxu1 %v4148_v32 }
 0x3bb   : > { %4151 = vmatpush3.bf16.msra.mxu1 %v4150_v37 }
 0x3bc   : > { %4153 = vmatprep.subr.bf16.mxu1 %v4152_v38 }
 0x3bf   : > { %4155 = vmatpush3.bf16.msra.mxu1 %v4154_v41 }
 0x3c0   : > { %4157 = vmatprep.subr.bf16.mxu1 %v4156_v49 }
 0x3c3   : > { %4159 = vmatpush3.bf16.msra.mxu1 %v4158_v53 }
 0x3c4   : > { %4161 = vmatprep.subr.bf16.mxu1 %v4160_v57 }
 0x3c7   : > { %4163 = vmatpush3.bf16.msra.mxu1 %v4162_v61 }
 0x3c8   : > { %4165 = vmatprep.subr.bf16.mxu1 %v4164_v1 }
 0x3cb   : > { %4167 = vmatpush3.bf16.msra.mxu1 %v4166_v6 }
 0x3cc   : > { %3894 = vmatprep.subr.mxu1 %v4342_v24 }
 0x465   : > { %v4774_v42 = vpop.f32.mrb[18].mxu1  ;;  %v1967_v17 = vpop.f32.mrb[12].mxu0 }
 0x466   : > { %v3796_v43 = vpop.f32.mrb[19].mxu1  ;;  %v3852_v18 = vpop.f32.mrb[13].mxu0  ;;  %3862 = vmatmul.mubr.msk.f32.vlgmr.msra.gmra.mrb[14].mxu0 %vm1149_vm14, %v1967_v17  ;;  %v2218_v17 = vld [vmem:[%s5161_s2 + $0x110] sm:$0x1] }
 0x467   : > { %3866 = vmatprep.mubr.msk.f32.mxu0 %vm4341_vm3, %v4342_v24  ;;  %v2918_v18 = vld [vmem:[%s5160_s1 + $0x268] sm:$0xff] }
 0x469   : > { %v1456_v44 = vpop.f32.mrb[20].mxu1 }
 0x46a   : > { %v3803_v45 = vpop.f32.mrb[21].mxu1 }
 0x46d   : > { %v1529_v48 = vpop.f32.mrb[22].mxu1 }
 0x46e   : > { %v3810_v52 = vpop.f32.mrb[23].mxu1 }
 0x471   : > { %v1602_v56 = vpop.f32.mrb[24].mxu1 }
 0x472   : > { %v3817_v60 = vpop.f32.mrb[25].mxu1 }
 0x475   : > { %v1675_v0 = vpop.f32.mrb[26].mxu1 }
 0x476   : > { %v3824_v5 = vpop.f32.mrb[27].mxu1 }
 0x479   : > { %v1748_v11 = vpop.f32.mrb[28].mxu1 }
 0x47a   : > { %v4289_v14 = vpack.i.bf16 %v1456_v44, %v1748_v11  ;;  %v3831_v15 = vpop.f32.mrb[29].mxu1  ;;  %v3308_v44 = vld [vmem:[%s5160_s1 + $0x1e0] ss:$0 sm:$0xff] }
 0x47b   : > { %v2212_v11 = vld [vmem:[%s5161_s2 + $0xe0] sm:$0x1]  ;;  %v2215_v15 = vld [vmem:[%s5161_s2 + $0xf8] sm:$0x1] }
 0x47c   : > { %4290 = vrot.lane.b32.xlu0 %v4289_v14, %s4335_s8  ;;  %v2214_v14 = vld [vmem:[%s5161_s2 + $0xf0] sm:$0x1] }
 0x47d   : > { %v1821_v19 = vpop.f32.mrb[30].mxu1 }
 0x47e   : > { %v4294_v9 = vpack.i.bf16 %v1529_v48, %v1821_v19  ;;  %v3838_v20 = vpop.f32.mrb[31].mxu1  ;;  %v2919_v19 = vld [vmem:[%s5160_s1 + $0x270] sm:$0xff] }
 0x47f   : > { %v4174_v20 = vpack.c.bf16 %v2919_v19, %v2918_v18  ;;  %v2914_v19 = vld [vmem:[%s5160_s1 + $0x248] sm:$0xff] }
 0x480   : > { %4295 = vrot.lane.b32.xlu1 %v4294_v9, %s4338_s29  ;;  %v2902_v9 = vld [vmem:[%s5160_s1 + $0x1e8] sm:$0xff] }
 0x481   : > { %v1894_v21 = vpop.f32.mrb[32].mxu1 }
 0x482   : > { %v4299_v22 = vpack.i.bf16 %v1602_v56, %v1894_v21  ;;  %v3845_v23 = vpop.f32.mrb[33].mxu1  ;;  %v2903_v21 = vld [vmem:[%s5160_s1 + $0x1f0] sm:$0xff] }
 0x483   : > { %v2921_v23 = vld [vmem:[%s5160_s1 + $0x280] sm:$0xff] }
 0x484   : > { %4300 = vrot.lane.b32.xlu0 %v4299_v22, %s4340_s4  ;;  %v2920_v22 = vld [vmem:[%s5160_s1 + $0x278] sm:$0xff] }
 0x4ee   : > { %v4291_v25 = vpop.permute.xlu0 %4290 }
 0x4ef   : > { %v4293_v27 = vunpack.i.h.bf16 %v4291_v25  ;;  %v4292_v28 = vunpack.i.l.bf16 %v4291_v25  ;;  %v4176_v25 = vpack.c.bf16 %v2903_v21, %v2902_v9  ;;  %v2915_v9 = vld [vmem:[%s5160_s1 + $0x250] sm:$0xff] }
 0x4f1   : > { %v1995_v32 = vsel %vm1149_vm14, %v4774_v42, %v4293_v27  ;;  %v1998_v35 = vsel %vm1149_vm14, %v1675_v0, %v4292_v28  ;;  %v2904_v27 = vld [vmem:[%s5160_s1 + $0x1f8] sm:$0xff]  ;;  %v2905_v28 = vld [vmem:[%s5160_s1 + $0x200] sm:$0xff] }
 0x4f2   : > { %v4296_v26 = vpop.permute.xlu1 %4295 }
 0x4f3   : > { %v4298_v29 = vunpack.i.h.bf16 %v4296_v26  ;;  %v4297_v30 = vunpack.i.l.bf16 %v4296_v26  ;;  %v4178_v26 = vpack.c.bf16 %v2921_v23, %v2920_v22  ;;  %v2932_v23 = vld [vmem:[%s5160_s1 + $0x2d8] sm:$0xff] }
 0x4f5   : > { %v1999_v36 = vsel %vm360_vm4, %v1998_v35, %v4297_v30  ;;  %v1996_v37 = vsel %vm360_vm4, %v1995_v32, %v4298_v29  ;;  %v2922_v29 = vld [vmem:[%s5160_s1 + $0x288] sm:$0xff]  ;;  %v2923_v30 = vld [vmem:[%s5160_s1 + $0x290] sm:$0xff] }
 0x4f6   : > { %v4301_v31 = vpop.permute.xlu0 %4300  ;;  %v2906_v32 = vld [vmem:[%s5160_s1 + $0x208] sm:$0xff]  ;;  %v2907_v35 = vld [vmem:[%s5160_s1 + $0x210] sm:$0xff] }
 0x4f7   : > { %v4303_v33 = vunpack.i.h.bf16 %v4301_v31  ;;  %v4302_v34 = vunpack.i.l.bf16 %v4301_v31  ;;  %v4180_v31 = vpack.c.bf16 %v2905_v28, %v2904_v27  ;;  %v2959_v28 = vld [vmem:[%s5160_s1 + $0x3b0] sm:$0xff] }
 0x4f9   : > { %v2000_v38 = vsel %vm1160_vm1, %v1999_v36, %v4302_v34  ;;  %v1997_v39 = vsel %vm1160_vm1, %v1996_v37, %v4303_v33  ;;  %v2950_v33 = vld [vmem:[%s5160_s1 + $0x368] sm:$0xff]  ;;  %v4182_v34 = vpack.c.bf16 %v2923_v30, %v2922_v29  ;;  %v2924_v36 = vld [vmem:[%s5160_s1 + $0x298] sm:$0xff]  ;;  %v2951_v37 = vld [vmem:[%s5160_s1 + $0x370] sm:$0xff] }
 0x4fa   : > { %2109 = vmatprep.mubr.f32.mxu1 %v2000_v38  ;;  %v2925_v38 = vld [vmem:[%s5160_s1 + $0x2a0] sm:$0xff]  ;;  %v2916_v29 = vld [vmem:[%s5160_s1 + $0x258] sm:$0xff] }
 0x4fb   : > { %2110 = vmatmul.mubr.f32.vlgmr.msra.gmra.mrb[34].mxu1 %v1997_v39  ;;  %v4206_v39 = vpack.c.bf16 %v2951_v37, %v2950_v33  ;;  %v2917_v30 = vld [vmem:[%s5160_s1 + $0x260] sm:$0xff]  ;;  %v2942_v33 = vld [vmem:[%s5160_s1 + $0x328] sm:$0xff] }
 0x4fc   : > { %3896 = vmatprep.mubr.msk.f32.mxu1 %vm4341_vm3, %v4342_v24 }
 0x539   : > { %v2181_v40 = vpop.f32.mrb[14].mxu0 }
 0x53a   : > { %v3863_v41 = vpop.f32.mrb[15].mxu0 }
 0x53b   : > { %v2935_v41 = vld [vmem:[%s5160_s1 + $0x2f0] sm:$0xff] }
 0x5ce   : > { %v3494_v42 = vpop.f32.mrb[34].mxu1 }
 0x5cf   : > { %v3495_v43 = vpop.f32.mrb[35].mxu1 }
 0x5d0   : > { %v3496_v45 = vadd.f32 %v3495_v43, %v3494_v42  ;;  %v2952_v43 = vld [vmem:[%s5160_s1 + $0x378] sm:$0xff] }
 0x5d2   : > { %v2112_v46 = vadd.f32 %v3496_v45, %v3308_v44  ;;  %v2953_v44 = vld [vmem:[%s5160_s1 + $0x380] sm:$0xff]  ;;  %v4184_v45 = vpack.c.bf16 %v2907_v35, %v2906_v32  ;;  %v4204_v32 = vpack.c.bf16 %v2917_v30, %v2916_v29 }
 0x5d4   : > { %v2182_v47 = vadd.f32 %v2181_v40, %v2112_v46  ;;  %v2934_v40 = vld [vmem:[%s5160_s1 + $0x2e8] sm:$0xff]  ;;  %v2908_v46 = vld [vmem:[%s5160_s1 + $0x218] sm:$0xff] }
 0x5d5   : > { %v4208_v42 = vpack.c.bf16 %v2935_v41, %v2934_v40  ;;  %v2944_v41 = vld [vmem:[%s5160_s1 + $0x338] sm:$0xff] }
 0x5d6   : > { %vm2185_vm7 = vcmp.ge.f32.partialorder %v2182_v47, 0.0  ;;  %v2186_v48 = vmul.f32 0.2, %v2182_v47 }
 0x5d8   : > { %v2187_v49 = vsel %vm2185_vm7, %v2182_v47, %v2186_v48  ;;  %v4210_v47 = vpack.c.bf16 %v2953_v44, %v2952_v43  ;;  %v2936_v48 = vld [vmem:[%s5160_s1 + $0x2f8] sm:$0xff]  ;;  %v2962_v44 = vld [vmem:[%s5160_s1 + $0x3c8] sm:$0xff] }
 0x5d9   : > { %v2189_v50 = vsel %vm2188_vm8, %v2187_v49, 0.0 }
 0x5da   : > { %v2190_v51 = vrot.slane %v2189_v50, 4 }
 0x5dc   : > { %v2191_v52 = vadd.f32 %v2190_v51, %v2189_v50  ;;  %v2909_v50 = vld [vmem:[%s5160_s1 + $0x220] sm:$0xff]  ;;  %v2926_v51 = vld [vmem:[%s5160_s1 + $0x2a8] sm:$0xff] }
 0x5de   : > { %v2192_v53 = vrot.slane %v2191_v52, 2 }
 0x5e0   : > { %v2193_v54 = vadd.f32 %v2192_v53, %v2191_v52  ;;  %v2937_v52 = vld [vmem:[%s5160_s1 + $0x300] sm:$0xff]  ;;  %v2927_v53 = vld [vmem:[%s5160_s1 + $0x2b0] sm:$0xff] }
 0x5e2   : > { %v2194_v55 = vrot.slane %v2193_v54, 1 }
 0x5e4   : > { %v2195_v56 = vadd.f32 %v2194_v55, %v2193_v54  ;;  %v4212_v54 = vpack.c.bf16 %v2937_v52, %v2936_v48  ;;  %v2954_v55 = vld [vmem:[%s5160_s1 + $0x388] sm:$0xff] }
 0x5e5   : > { %v2946_v48 = vld [vmem:[%s5160_s1 + $0x348] sm:$0xff] }
 0x5e6   : > { %v2197_v57 = vmul.f32 0.25, %v2195_v56  ;;  %v2955_v56 = vld [vmem:[%s5160_s1 + $0x390] sm:$0xff] }
 0x5e8   : > { %v2198_v58 = vsub.f32 %v2187_v49, %v2197_v57  ;;  %v4186_v49 = vpack.c.bf16 %v2925_v38, %v2924_v36  ;;  %v4214_v57 = vpack.c.bf16 %v2955_v56, %v2954_v55  ;;  %v2960_v38 = vld [vmem:[%s5160_s1 + $0x3b8] sm:$0xff]  ;;  %v2965_v56 = vld [vmem:[%s5160_s1 + $0x3e0] sm:$0xff] }
 0x5e9   : > { %v2964_v55 = vld [vmem:[%s5160_s1 + $0x3d8] sm:$0xff] }
 0x5ea   : > { %v2199_v59 = vmul.f32 %v2198_v58, %v2198_v58 }
 0x5ec   : > { %v2200_v60 = vsel %vm2188_vm8, %v2199_v59, 0.0  ;;  %v2939_v59 = vld [vmem:[%s5160_s1 + $0x310] sm:$0xff] }
 0x5ed   : > { %v2201_v61 = vrot.slane %v2200_v60, 4 }
 0x5ef   : > { %v2202_v62 = vadd.f32 %v2201_v61, %v2200_v60  ;;  %v4188_v60 = vpack.c.bf16 %v2909_v50, %v2908_v46  ;;  %v2910_v61 = vld [vmem:[%s5160_s1 + $0x228] sm:$0xff] }
 0x5f1   : > { %v2203_v63 = vrot.slane %v2202_v62, 2 }
 0x5f3   : > { %v2204_v0 = vadd.f32 %v2203_v63, %v2202_v62  ;;  %v2956_v62 = vld [vmem:[%s5160_s1 + $0x398] sm:$0xff]  ;;  %v4190_v63 = vpack.c.bf16 %v2927_v53, %v2926_v51 }
 0x5f5   : > { %v2205_v1 = vrot.slane %v2204_v0, 1 }
 0x5f7   : > { %v2206_v2 = vadd.f32 %v2205_v1, %v2204_v0  ;;  %v2911_v0 = vld [vmem:[%s5160_s1 + $0x230] sm:$0xff]  ;;  %v2928_v1 = vld [vmem:[%s5160_s1 + $0x2b8] sm:$0xff] }
 0x5f9   : > { %v2207_v3 = vmul.f32 0.25, %v2206_v2 }
 0x5fb   : > { %v2208_v4 = vadd.f32 0.8, %v2207_v3  ;;  %v2957_v3 = vld [vmem:[%s5160_s1 + $0x3a0] sm:$0xff] }
 0x5fd   : > { %4316 = vrsqrt.f32 %v2208_v4  ;;  %v2929_v4 = vld [vmem:[%s5160_s1 + $0x2c0] sm:$0xff] }
 0x607   : > { %v4317_v5 = vpop.eup %4316 }
 0x608   : > { %v2210_v6 = vmul.f32 %v4317_v5, %v2198_v58  ;;  %v2938_v58 = vld [vmem:[%s5160_s1 + $0x308] sm:$0xff]  ;;  %v4218_v5 = vpack.c.bf16 %v2957_v3, %v2956_v62 }
 0x609   : > { %v4216_v2 = vpack.c.bf16 %v2939_v59, %v2938_v58  ;;  %v2948_v59 = vld [vmem:[%s5160_s1 + $0x358] sm:$0xff] }
 0x60a   : > { %3865 = vmatpush3.msk.msra.mxu0 %vm2224_vm9, %v2210_v6  ;;  %3895 = vmatpush3.msk.msra.mxu1 %vm2224_vm9, %v2210_v6 }
 0x60b   : > { %3867 = vmatmul.mubr.msk.f32.vlgmr.msra.gmra.mrb[16].mxu0 %vm2220_vm10, %v2211_v8  ;;  %3869 = vmatprep.subr.mxu0 %v4342_v24  ;;  %v2941_v8 = vld [vmem:[%s5160_s1 + $0x320] sm:$0xff] }
 0x60c   : > { %3904 = vmatprep.subr.mxu1 %v4342_v24  ;;  %3870 = vmatpush3.msk.msra.mxu0 %vm2224_vm9, %v2210_v6 }
 0x60d   : > { %3897 = vmatmul.mubr.msk.f32.vlgmr.msra.gmra.mrb[36].mxu1 %vm2220_vm10, %v2217_v10  ;;  %3871 = vmatprep.mubr.msk.f32.mxu0 %vm4341_vm3, %v4342_v24  ;;  %v4192_v10 = vpack.c.bf16 %v2911_v0, %v2910_v61 }
 0x60e   : > { %3905 = vmatpush3.msk.msra.mxu1 %vm2224_vm9, %v2210_v6  ;;  %3874 = vmatprep.subr.mxu0 %v4342_v24 }
 0x60f   : > { %3872 = vmatmul.mubr.msk.f32.vlgmr.msra.gmra.mrb[18].mxu0 %vm2220_vm10, %v2212_v11  ;;  %3906 = vmatprep.mubr.msk.f32.mxu1 %vm4341_vm3, %v4342_v24  ;;  %v4194_v11 = vpack.c.bf16 %v2929_v4, %v2928_v1 }
 0x610   : > { %3875 = vmatpush3.msk.msra.mxu0 %vm2224_vm9, %v2210_v6  ;;  %3876 = vmatprep.mubr.msk.f32.mxu0 %vm4341_vm3, %v4342_v24 }
 0x611   : > { %3879 = vmatprep.subr.mxu0 %v4342_v24  ;;  %3907 = vmatmul.mubr.msk.f32.vlgmr.msra.gmra.mrb[38].mxu1 %vm2220_vm10, %v2219_v12  ;;  %v2912_v12 = vld [vmem:[%s5160_s1 + $0x238] sm:$0xff] }
 0x612   : > { %4207 = vmatprep.subr.bf16.mxu1 %v4206_v39  ;;  %v2961_v39 = vld [vmem:[%s5160_s1 + $0x3c0] sm:$0xff] }
 0x613   : > { %3877 = vmatmul.mubr.msk.f32.vlgmr.msra.gmra.mrb[20].mxu0 %vm2220_vm10, %v2213_v13  ;;  %4209 = vmatpush3.bf16.msra.mxu1 %v4208_v42  ;;  %v2913_v13 = vld [vmem:[%s5160_s1 + $0x240] sm:$0xff]  ;;  %v4226_v40 = vpack.c.bf16 %v2961_v39, %v2960_v38 }
 0x614   : > { %3880 = vmatpush3.msk.msra.mxu0 %vm2224_vm9, %v2210_v6  ;;  %3881 = vmatprep.mubr.msk.f32.mxu0 %vm4341_vm3, %v4342_v24  ;;  %v2945_v42 = vld [vmem:[%s5160_s1 + $0x340] sm:$0xff] }
 0x615   : > { %3884 = vmatprep.subr.mxu0 %v4342_v24  ;;  %4211 = vmatprep.subr.bf16.mxu1 %v4210_v47  ;;  %v4228_v43 = vpack.c.bf16 %v2945_v42, %v2944_v41 }
 0x617   : > { %3882 = vmatmul.mubr.msk.f32.vlgmr.msra.gmra.mrb[22].mxu0 %vm2220_vm10, %v2214_v14  ;;  %4213 = vmatpush3.bf16.msra.mxu1 %v4212_v54 }
 0x618   : > { %3885 = vmatpush3.msk.msra.mxu0 %vm2224_vm9, %v2210_v6  ;;  %3886 = vmatprep.mubr.msk.f32.mxu0 %vm4341_vm3, %v4342_v24 }
 0x619   : > { %3889 = vmatprep.subr.mxu0 %v4342_v24  ;;  %4215 = vmatprep.subr.bf16.mxu1 %v4214_v57  ;;  %v4234_v57 = vpack.c.bf16 %v2965_v56, %v2964_v55 }
 0x61b   : > { %3887 = vmatmul.mubr.msk.f32.vlgmr.msra.gmra.mrb[24].mxu0 %vm2220_vm10, %v2215_v15  ;;  %4217 = vmatpush3.bf16.msra.mxu1 %v4216_v2  ;;  %v2930_v15 = vld [vmem:[%s5160_s1 + $0x2c8] sm:$0xff] }
 0x61c   : > { %3890 = vmatpush3.msk.msra.mxu0 %vm2224_vm9, %v2210_v6  ;;  %3891 = vmatprep.mubr.msk.f32.mxu0 %vm4341_vm3, %v4342_v24 }
 0x61d   : > { %3899 = vmatprep.subr.mxu0 %v4342_v24  ;;  %4219 = vmatprep.subr.bf16.mxu1 %v4218_v5 }
 0x61f   : > { %3892 = vmatmul.mubr.msk.f32.vlgmr.msra.gmra.mrb[26].mxu0 %vm2220_vm10, %v2216_v16  ;;  %v2931_v16 = vld [vmem:[%s5160_s1 + $0x2d0] sm:$0xff] }
 0x620   : > { %3900 = vmatpush3.msk.msra.mxu0 %vm2224_vm9, %v2210_v6  ;;  %3901 = vmatprep.mubr.msk.f32.mxu0 %vm4341_vm3, %v4342_v24  ;;  %v2940_v6 = vld [vmem:[%s5160_s1 + $0x318] sm:$0xff]  ;;  %v4198_v18 = vpack.c.bf16 %v2931_v16, %v2930_v15 }
 0x621   : > { %4175 = vmatprep.subr.bf16.mxu0 %v4174_v20  ;;  %v4220_v14 = vpack.c.bf16 %v2941_v8, %v2940_v6  ;;  %v4200_v20 = vpack.c.bf16 %v2915_v9, %v2914_v19  ;;  %v2969_v19 = vld [vmem:[%s5160_s1 + $0x400] sm:$0xff] }
 0x623   : > { %3902 = vmatmul.mubr.msk.f32.vlgmr.msra.gmra.mrb[28].mxu0 %vm2220_vm10, %v2218_v17  ;;  %v4196_v17 = vpack.c.bf16 %v2913_v13, %v2912_v12  ;;  %4221 = vmatpush3.bf16.msra.mxu1 %v4220_v14 }
 0x624   : > { %4177 = vmatpush3.bf16.msra.mxu0 %v4176_v25  ;;  %v2933_v25 = vld [vmem:[%s5160_s1 + $0x2e0] sm:$0xff] }
 0x625   : > { %4179 = vmatprep.subr.bf16.mxu0 %v4178_v26  ;;  %v2958_v26 = vld [vmem:[%s5160_s1 + $0x3a8] sm:$0xff]  ;;  %v4202_v27 = vpack.c.bf16 %v2933_v25, %v2932_v23  ;;  %v2972_v23 = vld [vmem:[%s5160_s1 + $0x418] sm:$0xff] }
 0x628   : > { %4181 = vmatpush3.bf16.msra.mxu0 %v4180_v31  ;;  %v4222_v31 = vpack.c.bf16 %v2959_v28, %v2958_v26 }
 0x629   : > { %4183 = vmatprep.subr.bf16.mxu0 %v4182_v34  ;;  %v2943_v34 = vld [vmem:[%s5160_s1 + $0x330] sm:$0xff] }
 0x62a   : > { %v4224_v36 = vpack.c.bf16 %v2943_v34, %v2942_v33  ;;  %4223 = vmatprep.subr.bf16.mxu1 %v4222_v31  ;;  %v2974_v34 = vld [vmem:[%s5160_s1 + $0x428] sm:$0x1] }
 0x62c   : > { %4185 = vmatpush3.bf16.msra.mxu0 %v4184_v45  ;;  %4225 = vmatpush3.bf16.msra.mxu1 %v4224_v36  ;;  %v2963_v45 = vld [vmem:[%s5160_s1 + $0x3d0] sm:$0xff] }
 0x62d   : > { %4187 = vmatprep.subr.bf16.mxu0 %v4186_v49  ;;  %4227 = vmatprep.subr.bf16.mxu1 %v4226_v40  ;;  %v4230_v47 = vpack.c.bf16 %v2963_v45, %v2962_v44  ;;  %v2947_v49 = vld [vmem:[%s5160_s1 + $0x350] sm:$0xff] }
 0x62e   : > { %v4232_v51 = vpack.c.bf16 %v2947_v49, %v2946_v48  ;;  %v3198_v48 = vld [vmem:[%s5160_s1 + $0x430] sm:$0x1] }
 0x630   : > { %4189 = vmatpush3.bf16.msra.mxu0 %v4188_v60  ;;  %4229 = vmatpush3.bf16.msra.mxu1 %v4228_v43  ;;  %v2949_v60 = vld [vmem:[%s5160_s1 + $0x360] sm:$0xff] }
 0x631   : > { %4191 = vmatprep.subr.bf16.mxu0 %v4190_v63  ;;  %4231 = vmatprep.subr.bf16.mxu1 %v4230_v47  ;;  %v4236_v61 = vpack.c.bf16 %v2949_v60, %v2948_v59 }
 0x634   : > { %4193 = vmatpush3.bf16.msra.mxu0 %v4192_v10  ;;  %4233 = vmatpush3.bf16.msra.mxu1 %v4232_v51  ;;  %v2966_v10 = vld [vmem:[%s5160_s1 + $0x3e8] sm:$0xff] }
 0x635   : > { %4195 = vmatprep.subr.bf16.mxu0 %v4194_v11  ;;  %4235 = vmatprep.subr.bf16.mxu1 %v4234_v57  ;;  %v2967_v11 = vld [vmem:[%s5160_s1 + $0x3f0] sm:$0xff] }
 0x636   : > { %v4239_v15 = vpack.c.bf16 %v2967_v11, %v2966_v10 }
 0x638   : > { %4197 = vmatpush3.bf16.msra.mxu0 %v4196_v17  ;;  %4237 = vmatpush3.bf16.msra.mxu1 %v4236_v61 }
 0x639   : > { %4199 = vmatprep.subr.bf16.mxu0 %v4198_v18  ;;  %v2968_v18 = vld [vmem:[%s5160_s1 + $0x3f8] sm:$0xff] }
 0x63a   : > { %v4242_v9 = vpack.c.bf16 %v2969_v19, %v2968_v18 }
 0x63c   : > { %4201 = vmatpush3.bf16.msra.mxu0 %v4200_v20  ;;  %v2970_v20 = vld [vmem:[%s5160_s1 + $0x408] sm:$0xff] }
 0x63d   : > { %4203 = vmatprep.subr.bf16.mxu0 %v4202_v27 }
 0x640   : > { %4205 = vmatpush3.bf16.msra.mxu0 %v4204_v32 }
 0x641   : > { %4238 = vmatprep.subr.bf16.mxu0 %v4333_v7 }
 0x6de   : > { %v5043_v21 = vpop.f32.mrb[16].mxu0 }
 0x6df   : > { %v3868_v22 = vpop.f32.mrb[17].mxu0 }
 0x6e0   : > { %v2732_v58 = vpop.f32.mrb[36].mxu1 }
 0x6e1   : > { %v3898_v62 = vpop.f32.mrb[37].mxu1 }
 0x6e2   : > { %v2367_v35 = vpop.f32.mrb[18].mxu0 }
 0x6e3   : > { %v3873_v37 = vpop.f32.mrb[19].mxu0 }
 0x6e4   : > { %v2878_v1 = vpop.f32.mrb[38].mxu1 }
 0x6e5   : > { %v3908_v3 = vpop.f32.mrb[39].mxu1 }
 0x6e6   : > { %v2440_v46 = vpop.f32.mrb[20].mxu0 }
 0x6e7   : > { %v3878_v50 = vpop.f32.mrb[21].mxu0 }
 0x6ea   : > { %v2513_v52 = vpop.f32.mrb[22].mxu0 }
 0x6eb   : > { %v4304_v53 = vpack.i.bf16 %v2367_v35, %v2513_v52  ;;  %v3883_v54 = vpop.f32.mrb[23].mxu0  ;;  %v3199_v52 = vld [vmem:[%s5160_s1 + $0x438] sm:$0x1] }
 0x6ed   : > { %4305 = vrot.lane.b32.xlu1 %v4304_v53, %s4338_s29 }
 0x6ee   : > { %v2586_v63 = vpop.f32.mrb[24].mxu0 }
 0x6ef   : > { %v3888_v0 = vpop.f32.mrb[25].mxu0 }
 0x6f2   : > { %v2659_v2 = vpop.f32.mrb[26].mxu0 }
 0x6f3   : > { %v3893_v4 = vpop.f32.mrb[27].mxu0 }
 0x6f6   : > { %v2805_v5 = vpop.f32.mrb[28].mxu0 }
 0x6f7   : > { %v4309_v6 = vpack.i.bf16 %v2659_v2, %v2805_v5  ;;  %v3903_v8 = vpop.f32.mrb[29].mxu0 }
 0x6f9   : > { %4310 = vrot.lane.b32.xlu0 %v4309_v6, %s4338_s29 }
 0x75f   : > { %v4306_v12 = vpop.permute.xlu1 %4305 }
 0x760   : > { %v4308_v13 = vunpack.i.h.bf16 %v4306_v12  ;;  %v4307_v14 = vunpack.i.l.bf16 %v4306_v12 }
 0x762   : > { %v2899_v16 = vsel %vm360_vm4, %v2440_v46, %v4307_v14  ;;  %v2898_v17 = vsel %vm360_vm4, %v5043_v21, %v4308_v13  ;;  %v2971_v21 = vld [vmem:[%s5160_s1 + $0x410] sm:$0xff] }
 0x763   : > { %3042 = vmatprep.mubr.f32.mxu0 %v2899_v16  ;;  %v4245_v22 = vpack.c.bf16 %v2971_v21, %v2970_v20 }
 0x764   : > { %3043 = vmatmul.mubr.f32.vlgmr.msra.gmra.mrb[30].mxu0 %v2898_v17 }
 0x765   : > { %4240 = vmatpush3.bf16.msra.mxu0 %v4239_v15  ;;  %3925 = vmatprep.mubr.msk.f32.mxu0 %vm4341_vm3, %v4342_v24  ;;  %v2973_v24 = vld [vmem:[%s5160_s1 + $0x420] sm:$0xff] }
 0x766   : > { %4241 = vmatprep.subr.bf16.mxu0 %v4333_v7  ;;  %v4248_v28 = vpack.c.bf16 %v2973_v24, %v2972_v23 }
 0x769   : > { %4243 = vmatpush3.bf16.msra.mxu0 %v4242_v9 }
 0x76a   : > { %4244 = vmatprep.subr.bf16.mxu0 %v4333_v7 }
 0x76b   : > { %v4311_v25 = vpop.permute.xlu0 %4310 }
 0x76c   : > { %v4313_v26 = vunpack.i.h.bf16 %v4311_v25  ;;  %v4312_v27 = vunpack.i.l.bf16 %v4311_v25 }
 0x76d   : > { %4246 = vmatpush3.bf16.msra.mxu0 %v4245_v22 }
 0x76e   : > { %v2901_v29 = vsel %vm360_vm4, %v2732_v58, %v4312_v27  ;;  %v2900_v30 = vsel %vm360_vm4, %v2586_v63, %v4313_v26  ;;  %4247 = vmatprep.subr.bf16.mxu0 %v4333_v7 }
 0x76f   : > { %3112 = vmatprep.mubr.f32.mxu1 %v2901_v29 }
 0x770   : > { %3113 = vmatmul.mubr.f32.vlgmr.msra.gmra.mrb[40].mxu1 %v2900_v30 }
 0x771   : > { %4249 = vmatpush3.bf16.msra.mxu0 %v4248_v28 }
 0x774   : > { %3926 = vmatmul.mubr.msk.f32.vlgmr.msra.gmra.mrb[32].mxu0 %vm360_vm4, %v2878_v1  ;;  %vm3201_vm4 = vcmask 1040384  }
 0x837   : > { %v3552_v31 = vpop.f32.mrb[30].mxu0 }
 0x838   : > { %v3553_v32 = vpop.f32.mrb[31].mxu0 }
 0x839   : > { %v3554_v33 = vadd.f32 %v3553_v32, %v3552_v31 }
 0x83b   : > { %v3045_v37 = vadd.f32 %v3554_v33, %v2974_v34 }
 0x843   : > { %v3587_v35 = vpop.f32.mrb[40].mxu1 }
 0x844   : > { %v3588_v36 = vpop.f32.mrb[41].mxu1 }
 0x845   : > { %v3589_v38 = vadd.f32 %v3588_v36, %v3587_v35 }
 0x847   : > { %v3115_v39 = vadd.f32 %v3589_v38, %v3045_v37  ;;  %v3184_v40 = vpop.f32.mrb[32].mxu0 }
 0x848   : > { %v3927_v41 = vpop.f32.mrb[33].mxu0 }
 0x849   : > { %v3185_v7 = vadd.f32 %v3184_v40, %v3115_v39 }
 0x84b   : > { %vm3188_vm11 = vcmp.ge.f32.partialorder %v3185_v7, 0.0  ;;  %v3189_v42 = vmul.f32 0.2, %v3185_v7 }
 0x84d   : > { %v3190_v43 = vsel %vm3188_vm11, %v3185_v7, %v3189_v42 }
 0x84e   : > { %v3192_v44 = vsub.f32 %v3190_v43, %v3190_v43 }
 0x850   : > { %v3193_v45 = vmul.f32 %v3192_v44, %v3192_v44 }
 0x852   : > { %v3195_v46 = vadd.f32 0.8, %v3193_v45 }
 0x854   : > { %4318 = vrsqrt.f32 %v3195_v46 }
 0x85e   : > { %v4319_v47 = vpop.eup %4318 }
 0x85f   : > { %v3197_v49 = vmul.f32 %v4319_v47, %v3192_v44 }
 0x861   : > { %v3200_v50 = vmul.f32 %v3198_v48, %v3197_v49 }
 0x863   : > { %v3202_v51 = vsel %vm3201_vm4, %v3200_v50, 0.0 }
 0x864   : > { %3203 = vadd.xlane.f32.xlu1 %v3202_v51 }
 0x8f1   : > { %v3204_v53 = vpop.xlane.xlu1 %3203 }
 0x8f2   : > { %v3205_v54 = vadd.f32 %v3204_v53, %v3199_v52 }
 0x8f4   : > { %v3329_v55 = vmul.f32 -1.442695, %v3205_v54 }
 0x8f6   : > { %4320 = vpow2.f32 %v3329_v55 }
 0x900   : > { %v4321_v56 = vpop.eup %4320 }
 0x901   : > { %v3209_v57 = vadd.f32 1.0, %v4321_v56 }
 0x903   : > { %4322 = vrcp.f32 %v3209_v57 }
 0x90d   : > { %v4323_v58 = vpop.eup %4322 }
 0x90e   : > { %3213 = vst.msk [vmem:[%s166_s11] sm:$0x1] %vm3212_vm12, %v4323_v58 }
 0x90f PF: > { %s13_s12 = sadd.s32 1, %s4330_s12  }
 0x910   : > { %p10_p4 = scmp.ge.s32.totalorder %s13_s12, 4  }
 0x912   :  { %12 = sbr.rel (!%p10_p4) target bundleno = 1 (0x1), region = 62 }

</bundles_post_ra>
